<compile_context>
chip_gen: v5e
topology: v5e:2x2
jax: 0.10.0
libtpu: 0.0.40
codegen_flags: <defaults>
</compile_context>

<pallas_src>
import jax
import jax.numpy as jnp
from jax.experimental import pallas as pl
from jax.experimental.pallas import tpu as pltpu


def _composer_kernel(lc_ref, lh_ref, rc_ref, rh_ref, w_ref, b_ref,
                     c_ref, h_ref):
    """lc/lh/rc/rh: (TB, M) f32.  w_ref: (2M, 4M) bf16 = [Wl ; Wr].
    b_ref: (1, 4M) f32.  c_ref: (TB, M) f32.  h_ref: (TB, M) bf16 (or f32)."""
    M = c_ref.shape[1]
    # In-kernel bf16 cast (MXU-native); f32 accumulation on the MXU.
    lh = lh_ref[...].astype(w_ref.dtype)
    rh = rh_ref[...].astype(w_ref.dtype)
    z = (jnp.dot(lh, w_ref[0:M, :], preferred_element_type=jnp.float32)
         + jnp.dot(rh, w_ref[M:2 * M, :], preferred_element_type=jnp.float32)
         + b_ref[...])
    i = jax.nn.sigmoid(z[:, 0 * M:1 * M])    # input gate
    lf = jax.nn.sigmoid(z[:, 1 * M:2 * M])   # left forget gate
    rf = jax.nn.sigmoid(z[:, 2 * M:3 * M])   # right forget gate
    u = jnp.tanh(z[:, 3 * M:4 * M])          # cell update
    c = i * u + lf * lc_ref[...] + rf * rc_ref[...]
    c_ref[...] = c
    h_ref[...] = jnp.tanh(c).astype(h_ref.dtype)


def _round_up(x, m):
    return ((x + m - 1) // m) * m


def binary_tree_composer_noattn(lc, lh, rc, rh, W, b, *, block_b=512,
                                h_dtype=jnp.bfloat16):
    """lc, lh, rc, rh: (B, M) float32.  W: (2M, 4M) bf16 = [Wl ; Wr].
    b: (1, 4M) float32.  Returns (c, h): c (B, M) f32, h (B, M) h_dtype.

    h defaults to bf16 (deliberate quantization vs the f32 PyTorch module: the
    next level consumes h through a bf16 MXU matmul anyway, and the f32 cell
    state c preserves the recurrence precision)."""
    B, M = lh.shape
    if M % 128 != 0:
        raise ValueError(f"mem_dim must be a multiple of 128 for lane-aligned "
                         f"gate slices/stores; got {M}")
    if W.shape != (2 * M, 4 * M) or b.shape != (1, 4 * M):
        raise ValueError("expected packed W (2M, 4M) and fused bias (1, 4M)")

    # Batch tile: multiple of 16 (bf16 sublane packing), as large as VMEM
    # comfortably allows, but keep >= 2 grid steps for v7x dual-TC sharding.
    tb = max(16, min(block_b, _round_up(B, 16)))
    tb = _round_up(tb, 16)
    if pl.cdiv(B, tb) < 2 and B > 16:
        tb = max(16, _round_up(pl.cdiv(B, 2), 16))
    grid = (pl.cdiv(B, tb),)   # ragged tail handled by Pallas boundary masking

    act_spec = pl.BlockSpec((tb, M), lambda i: (i, 0))

    # Weight/bias are grid-resident (constant block index). Single-buffer them
    # once they are big enough to matter (production M >= 512) — zero DMA cost,
    # halves the resident VMEM footprint on v5e (16 MiB default) / v7x (64 MiB).
    w_bytes = W.size * W.dtype.itemsize
    single_buffer_w = w_bytes >= (4 << 20)
    if single_buffer_w:
        w_spec = pl.BlockSpec((2 * M, 4 * M), lambda i: (0, 0),
                              pipeline_mode=pl.Buffered(1))
        b_spec = pl.BlockSpec((1, 4 * M), lambda i: (0, 0),
                              pipeline_mode=pl.Buffered(1))
        w_bufs = 1
    else:
        w_spec = pl.BlockSpec((2 * M, 4 * M), lambda i: (0, 0))
        b_spec = pl.BlockSpec((1, 4 * M), lambda i: (0, 0))
        w_bufs = 2

    h_bytes = jnp.dtype(h_dtype).itemsize
    vmem_est = (w_bufs * w_bytes
                + 2 * b.size * 4
                + 2 * 4 * (tb * M * 4)        # lc, lh, rc, rh, double-buffered
                + 2 * (tb * M * 4)            # c out, double-buffered
                + 2 * (tb * M * h_bytes)      # h out, double-buffered
                + 2 * (tb * 4 * M * 4))       # z / gate temporaries (rough)
    vmem_limit = min(max(int(vmem_est * 1.5) + (2 << 20), 32 << 20), 64 << 20)

    cost = pl.CostEstimate(
        flops=2 * B * (2 * M) * (4 * M),
        transcendentals=5 * B * M,   # 3 sigmoid + 2 tanh per node element (advisory)
        bytes_accessed=(4 * B * M * 4 + w_bytes + b.size * 4
                        + B * M * 4 + B * M * h_bytes),
    )

    c, h = pl.pallas_call(
        _composer_kernel,
        out_shape=(jax.ShapeDtypeStruct((B, M), jnp.float32),
                   jax.ShapeDtypeStruct((B, M), h_dtype)),
        grid=grid,
        in_specs=[act_spec, act_spec, act_spec, act_spec, w_spec, b_spec],
        out_specs=[act_spec, act_spec],
        compiler_params=pltpu.CompilerParams(
            dimension_semantics=("parallel",),
            vmem_limit_bytes=vmem_limit),
        cost_estimate=cost,
    )(lc, lh, rc, rh, W, b)

    return c, h


def init_params(key, mem_dim, dtype=jnp.bfloat16):
    """Deterministic init matching nn.Linear default (uniform +/- 1/sqrt(fan_in)).
    Returns packed W = [Wl ; Wr] (2M, 4M) in `dtype` and fused bias (1, 4M) f32,
    gate order [i, lf, rf, u] along the output (lane) axis."""
    bound = 1.0 / jnp.sqrt(jnp.float32(mem_dim))
    keys = jax.random.split(key, 16)
    # 8 Linear layers: (ilh, irh, lflh, lfrh, rflh, rfrh, ulh, urh)
    Ws = [jax.random.uniform(keys[k], (mem_dim, mem_dim),
                             minval=-bound, maxval=bound, dtype=jnp.float32)
          for k in range(8)]
    bs = [jax.random.uniform(keys[8 + k], (mem_dim,),
                             minval=-bound, maxval=bound, dtype=jnp.float32)
          for k in range(8)]
    # PyTorch Linear does x @ W.T + b, so store transposed weights.
    Wl = jnp.concatenate([Ws[0].T, Ws[2].T, Ws[4].T, Ws[6].T], axis=1)  # (M, 4M)
    Wr = jnp.concatenate([Ws[1].T, Ws[3].T, Ws[5].T, Ws[7].T], axis=1)  # (M, 4M)
    W = jnp.concatenate([Wl, Wr], axis=0).astype(dtype)                 # (2M, 4M)
    b = jnp.concatenate([bs[0] + bs[1], bs[2] + bs[3],
                         bs[4] + bs[5], bs[6] + bs[7]], axis=0)[None, :]  # (1, 4M)
    return W, b


def reference_forward(lc, lh, rc, rh, W, b):
    """f32 reference using the same bf16-quantized weights/activations."""
    M = lh.shape[1]
    Wf = W.astype(jnp.float32)
    lhq = lh.astype(W.dtype).astype(jnp.float32)
    rhq = rh.astype(W.dtype).astype(jnp.float32)
    z = lhq @ Wf[:M, :] + rhq @ Wf[M:, :] + b
    i = jax.nn.sigmoid(z[:, 0 * M:1 * M])
    lf = jax.nn.sigmoid(z[:, 1 * M:2 * M])
    rf = jax.nn.sigmoid(z[:, 2 * M:3 * M])
    u = jnp.tanh(z[:, 3 * M:4 * M])
    c = i * u + lf * lc + rf * rc
    return c, jnp.tanh(c)


if __name__ == "__main__":
    # One "tree level" of nodes per call; M multiple of 128 keeps gate slices
    # and output stores lane-aligned.
    B, MEM_DIM = 256, 128
    key = jax.random.PRNGKey(0)
    kp, k1, k2, k3, k4 = jax.random.split(key, 5)

    W, b = init_params(kp, MEM_DIM)
    lc = jax.random.normal(k1, (B, MEM_DIM), dtype=jnp.float32)
    lh = jax.random.normal(k2, (B, MEM_DIM), dtype=jnp.float32)
    rc = jax.random.normal(k3, (B, MEM_DIM), dtype=jnp.float32)
    rh = jax.random.normal(k4, (B, MEM_DIM), dtype=jnp.float32)

    c, h = binary_tree_composer_noattn(lc, lh, rc, rh, W, b)
    jax.block_until_ready((c, h))

    c_ref, h_ref = reference_forward(lc, lh, rc, rh, W, b)
    assert c.shape == (B, MEM_DIM) and h.shape == (B, MEM_DIM)
    assert c.dtype == jnp.float32 and h.dtype == jnp.bfloat16
    assert jnp.allclose(c, c_ref, atol=2e-3, rtol=2e-3)
    assert jnp.allclose(h.astype(jnp.float32), h_ref, atol=1e-2, rtol=1e-2)
    print("KERNEL_OK")
</pallas_src>

<mosaic_0001>
module attributes {stable_mosaic.version = 11 : i64} {
  func.func @_composer_kernel(%arg0: i32, %arg1: memref<128x128xf32, #tpu.memory_space<vmem>>, %arg2: memref<128x128xf32, #tpu.memory_space<vmem>>, %arg3: memref<128x128xf32, #tpu.memory_space<vmem>>, %arg4: memref<128x128xf32, #tpu.memory_space<vmem>>, %arg5: memref<256x512xbf16, #tpu.memory_space<vmem>>, %arg6: memref<1x512xf32, #tpu.memory_space<vmem>>, %arg7: memref<128x128xf32, #tpu.memory_space<vmem>>, %arg8: memref<128x128xbf16, #tpu.memory_space<vmem>>) attributes {dimension_semantics = [#tpu.dimension_semantics<parallel>], iteration_bounds = array<i64: 2>, scalar_prefetch = 0 : i64, scratch_operands = 0 : i64, tpu.core_type = #tpu.core_type<tc>, window_params = [{transform_indices = @transform_0, window_bounds = array<i64: 128, 128>}, {transform_indices = @transform_1, window_bounds = array<i64: 128, 128>}, {transform_indices = @transform_2, window_bounds = array<i64: 128, 128>}, {transform_indices = @transform_3, window_bounds = array<i64: 128, 128>}, {pipeline_mode = #tpu.pipeline_mode<synchronous>, transform_indices = @transform_4, window_bounds = array<i64: 256, 512>}, {pipeline_mode = #tpu.pipeline_mode<synchronous>, transform_indices = @transform_5, window_bounds = array<i64: 1, 512>}, {transform_indices = @transform_6, window_bounds = array<i64: 128, 128>}, {transform_indices = @transform_7, window_bounds = array<i64: 128, 128>}]} {
    %c0 = arith.constant 0 : index
    %c0_0 = arith.constant 0 : index
    %0 = vector.load %arg2[%c0, %c0_0] : memref<128x128xf32, #tpu.memory_space<vmem>>, vector<128x128xf32>
    %1 = arith.truncf %0 : vector<128x128xf32> to vector<128x128xbf16>
    %c0_1 = arith.constant 0 : index
    %c0_2 = arith.constant 0 : index
    %2 = vector.load %arg4[%c0_1, %c0_2] : memref<128x128xf32, #tpu.memory_space<vmem>>, vector<128x128xf32>
    %3 = arith.truncf %2 : vector<128x128xf32> to vector<128x128xbf16>
    %c0_3 = arith.constant 0 : index
    %c0_4 = arith.constant 0 : index
    %4 = vector.load %arg5[%c0_3, %c0_4] : memref<256x512xbf16, #tpu.memory_space<vmem>>, vector<128x512xbf16>
    %cst = arith.constant dense<0.000000e+00> : vector<128x512xf32>
    %5 = tpu.matmul %1, %4, %cst {dimension_numbers = #tpu.dot_dimension_numbers<[1], [0], [0], [1], [0, 0, 1, 1], [], []>} : vector<128x128xbf16>, vector<128x512xbf16>, vector<128x512xf32> -> vector<128x512xf32>
    %c128 = arith.constant 128 : index
    %c0_5 = arith.constant 0 : index
    %6 = vector.load %arg5[%c128, %c0_5] : memref<256x512xbf16, #tpu.memory_space<vmem>>, vector<128x512xbf16>
    %cst_6 = arith.constant dense<0.000000e+00> : vector<128x512xf32>
    %7 = tpu.matmul %3, %6, %cst_6 {dimension_numbers = #tpu.dot_dimension_numbers<[1], [0], [0], [1], [0, 0, 1, 1], [], []>} : vector<128x128xbf16>, vector<128x512xbf16>, vector<128x512xf32> -> vector<128x512xf32>
    %8 = arith.addf %5, %7 : vector<128x512xf32>
    %c0_7 = arith.constant 0 : index
    %c0_8 = arith.constant 0 : index
    %9 = vector.load %arg6[%c0_7, %c0_8] : memref<1x512xf32, #tpu.memory_space<vmem>>, vector<1x512xf32>
    %10 = vector.broadcast %9 : vector<1x512xf32> to vector<128x512xf32>
    %11 = arith.addf %8, %10 : vector<128x512xf32>
    %12 = vector.extract_strided_slice %11 {offsets = [0, 0], sizes = [128, 128], strides = [1, 1]} : vector<128x512xf32> to vector<128x128xf32>
    %13 = arith.negf %12 : vector<128x128xf32>
    %14 = math.exp %13 : vector<128x128xf32>
    %cst_9 = arith.constant 1.000000e+00 : f32
    %15 = vector.broadcast %cst_9 : f32 to vector<128x128xf32>
    %16 = arith.addf %15, %14 : vector<128x128xf32>
    %17 = arith.divf %15, %16 : vector<128x128xf32>
    %18 = vector.extract_strided_slice %11 {offsets = [0, 128], sizes = [128, 128], strides = [1, 1]} : vector<128x512xf32> to vector<128x128xf32>
    %19 = arith.negf %18 : vector<128x128xf32>
    %20 = math.exp %19 : vector<128x128xf32>
    %cst_10 = arith.constant 1.000000e+00 : f32
    %21 = vector.broadcast %cst_10 : f32 to vector<128x128xf32>
    %22 = arith.addf %21, %20 : vector<128x128xf32>
    %23 = arith.divf %21, %22 : vector<128x128xf32>
    %24 = vector.extract_strided_slice %11 {offsets = [0, 256], sizes = [128, 128], strides = [1, 1]} : vector<128x512xf32> to vector<128x128xf32>
    %25 = arith.negf %24 : vector<128x128xf32>
    %26 = math.exp %25 : vector<128x128xf32>
    %cst_11 = arith.constant 1.000000e+00 : f32
    %27 = vector.broadcast %cst_11 : f32 to vector<128x128xf32>
    %28 = arith.addf %27, %26 : vector<128x128xf32>
    %29 = arith.divf %27, %28 : vector<128x128xf32>
    %30 = vector.extract_strided_slice %11 {offsets = [0, 384], sizes = [128, 128], strides = [1, 1]} : vector<128x512xf32> to vector<128x128xf32>
    %31 = math.tanh %30 : vector<128x128xf32>
    %32 = arith.mulf %17, %31 : vector<128x128xf32>
    %c0_12 = arith.constant 0 : index
    %c0_13 = arith.constant 0 : index
    %33 = vector.load %arg1[%c0_12, %c0_13] : memref<128x128xf32, #tpu.memory_space<vmem>>, vector<128x128xf32>
    %34 = arith.mulf %23, %33 : vector<128x128xf32>
    %35 = arith.addf %32, %34 : vector<128x128xf32>
    %c0_14 = arith.constant 0 : index
    %c0_15 = arith.constant 0 : index
    %36 = vector.load %arg3[%c0_14, %c0_15] : memref<128x128xf32, #tpu.memory_space<vmem>>, vector<128x128xf32>
    %37 = arith.mulf %29, %36 : vector<128x128xf32>
    %38 = arith.addf %35, %37 : vector<128x128xf32>
    %c0_16 = arith.constant 0 : index
    %c0_17 = arith.constant 0 : index
    %39 = vector.load %arg7[%c0_16, %c0_17] : memref<128x128xf32, #tpu.memory_space<vmem>>, vector<128x128xf32>
    tpu.vector_store %arg7[%c0_16, %c0_17], %38 {strides = array<i32>} : memref<128x128xf32, #tpu.memory_space<vmem>>, vector<128x128xf32>,
    %40 = math.tanh %38 : vector<128x128xf32>
    %41 = arith.truncf %40 : vector<128x128xf32> to vector<128x128xbf16>
    %c0_18 = arith.constant 0 : index
    %c0_19 = arith.constant 0 : index
    %42 = vector.load %arg8[%c0_18, %c0_19] : memref<128x128xbf16, #tpu.memory_space<vmem>>, vector<128x128xbf16>
    tpu.vector_store %arg8[%c0_18, %c0_19], %41 {strides = array<i32>} : memref<128x128xbf16, #tpu.memory_space<vmem>>, vector<128x128xbf16>,
    return
  }
  func.func @transform_0(%arg0: i32) -> (i32, i32) {
    %c0_i32 = arith.constant 0 : i32
    %c0_i32_0 = arith.constant 0 : i32
    return %arg0, %c0_i32 : i32, i32
  }
  func.func @transform_1(%arg0: i32) -> (i32, i32) {
    %c0_i32 = arith.constant 0 : i32
    %c0_i32_0 = arith.constant 0 : i32
    return %arg0, %c0_i32 : i32, i32
  }
  func.func @transform_2(%arg0: i32) -> (i32, i32) {
    %c0_i32 = arith.constant 0 : i32
    %c0_i32_0 = arith.constant 0 : i32
    return %arg0, %c0_i32 : i32, i32
  }
  func.func @transform_3(%arg0: i32) -> (i32, i32) {
    %c0_i32 = arith.constant 0 : i32
    %c0_i32_0 = arith.constant 0 : i32
    return %arg0, %c0_i32 : i32, i32
  }
  func.func @transform_4(%arg0: i32) -> (i32, i32) {
    %c0_i32 = arith.constant 0 : i32
    %c0_i32_0 = arith.constant 0 : i32
    %c0_i32_1 = arith.constant 0 : i32
    return %c0_i32, %c0_i32_0 : i32, i32
  }
  func.func @transform_5(%arg0: i32) -> (i32, i32) {
    %c0_i32 = arith.constant 0 : i32
    %c0_i32_0 = arith.constant 0 : i32
    %c0_i32_1 = arith.constant 0 : i32
    return %c0_i32, %c0_i32_0 : i32, i32
  }
  func.func @transform_6(%arg0: i32) -> (i32, i32) {
    %c0_i32 = arith.constant 0 : i32
    %c0_i32_0 = arith.constant 0 : i32
    return %arg0, %c0_i32 : i32, i32
  }
  func.func @transform_7(%arg0: i32) -> (i32, i32) {
    %c0_i32 = arith.constant 0 : i32
    %c0_i32_0 = arith.constant 0 : i32
    return %arg0, %c0_i32 : i32, i32
  }
}

</mosaic_0001>

<bundles_post_ra>
// kernel: tpu_custom_call.1
= control target key start
LH: loop header
LB: loop body
LE: loop exit
PB: predicated region body
PF: predicated region fallthrough
CT: control target
= control target key end

     0   :  { %s5190_s0 = inlined_call_operand.hbm [shape: f32[256,128], index: 0, kind: input, shape index: {}]   ;;  %s5191_s1 = inlined_call_operand.hbm [shape: f32[256,128], index: 1, kind: input, shape index: {}]   ;;  %s5192_s2 = inlined_call_operand.hbm [shape: f32[256,128], index: 2, kind: input, shape index: {}]   ;;  %s5193_s3 = inlined_call_operand.hbm [shape: f32[256,128], index: 3, kind: input, shape index: {}]   ;;  %s5194_s4 = inlined_call_operand.hbm [shape: bf16[256,512], index: 4, kind: input, shape index: {}]   ;;  %s5195_s5 = inlined_call_operand.vmem [shape: f32[1,512], index: 5, kind: input, shape index: {}]   ;;  %s5196_s6 = inlined_call_operand.hbm [shape: f32[256,128], index: 6, kind: output, shape index: {0}]   ;;  %s5197_s7 = inlined_call_operand.hbm [shape: bf16[256,128], index: 7, kind: output, shape index: {1}]  }
   0x1   :  { %5206 = sst [smem:[#allocation51_spill]] %s5190_s0 }
   0x2   :  { %5207 = sst [smem:[#allocation52_spill]] %s5191_s1 }
   0x3   :  { %5208 = sst [smem:[#allocation53_spill]] %s5194_s4 }
   0x4   :  { %13 = vsyncpa [#allocation3], 0 }
   0x5   :  { %15 = vsyncpa [#allocation3 + $0x1], 0 }
   0x6   :  { %16 = vsyncpa [#allocation6], 0 }
   0x7   :  { %18 = vsyncpa [#allocation6 + $0x1], 0 }
   0x8   :  { %19 = vsyncpa [#allocation9], 0 }
   0x9   :  { %21 = vsyncpa [#allocation9 + $0x1], 0 }
   0xa   :  { %22 = vsyncpa [#allocation4], 0 }
   0xb   :  { %24 = vsyncpa [#allocation4 + $0x1], 0 }
   0xc   :  { %25 = vsyncpa [#allocation13], 0 }
   0xd   :  { %27 = vsyncpa [#allocation13 + $0x1], 0  ;;  %s3781_s24 = smov 0   ;;  %s3783_s25 = smov 0  }
   0xe   :  { %s3785_s26 = smov 0   ;;  %s3787_s27 = smov 0  }
   0xf LB: > { %5209 = sst [smem:[#allocation20_spill]] %s3718_s24  ;;  %s3802_s28 = sadd.s32 4294967295, %s3730_s27   ;;  %s3730_s27 = sphi %s3787_s27, %s5373_s27   ;;  %s3726_s26 = sphi %s3785_s26, %s5377_s26   ;;  %s3722_s25 = sphi %s3783_s25, %s5376_s25   ;;  %s3718_s24 = sphi %s3781_s24, %s5375_s24  }
  0x10   : > { %s2676_s29 = sadd.s32 4294967294, %s3730_s27   ;;  %p53_p0 = scmp.ne.s32.totalorder %s3722_s25, %s3718_s24 }
  0x11   : > { %p54_p1 = scmp.eq.s32.totalorder %s3802_s28, 0  ;;  %p197_p2 = scmp.eq.s32.totalorder %s3802_s28, 1 }
  0x12   : > { %p203_p3 = scmp.eq.s32.totalorder %s2676_s29, 1  ;;  %p2677_p5 = scmp.ge.s32.totalorder %s3730_s27, 1 }
  0x13   : > { %p3811_p4 = por %p54_p1, %p53_p0  ;;  %p236_p7 = scmp.lt.s32.totalorder %s3730_s27, 3 }
  0x14   : > { %p3816_p6 = por %p203_p3, %p53_p0  ;;  %s5213_s4 = sld [smem:[#allocation53_spill]] }
  0x15   : > { %p3824_p8 = pnand %p2677_p5, %p236_p7  ;;  %s3732_s13 = smov [#allocation10]  }
  0x16   : > { %s5211_s8 = scalar_select %p3816_p6, 1, 0 }
  0x17   : > { %p3145_p9 = pneg %p3824_p8  ;;  %s249_s14 = sshll.u32 %s3732_s13, 4  ;;  %s250_s14 = int_to_ptr.vmem [resolvable:$true] %s249_s14 }
  0x18   : > { %5212 = sst [smem:[#allocation21_spill]] %s5211_s8  ;;  %s3834_s15 = sadd.s32 1, %s3730_s27  }
  0x19   : > { %p3146_p10 = pnand %p3145_p9, %p54_p1  ;;  %5215 = sst [smem:[#allocation22_spill]] %s3834_s15 }
  0x1a   : > { %s247_s11 = sshll.u32 %s5213_s4, 4  ;;  %s3733_s16 = smov 256   ;;  %s248_s11 = int_to_ptr.hbm [resolvable:$true] %s247_s11 }
  0x1b   : > { %s3734_s17 = smov 16   ;;  %s37_s18 = ssub.s32 %s3730_s27, %s3834_s15 }
  0x1c   : > { %3148 = dma.hbm_to_vmem [thread:$0]  (!%p3146_p10), %s248_s11, 8192, %s250_s14, [#allocation9], %s3733_s16, %s3733_s16, %s3734_s17  }
  0x1d   : > { %s40_s19 = sadd.s32 1, %s3726_s26  ;;  %p38_p12 = scmp.eq.s32.totalorder %s37_s18, 0 }
  0x1e   : > { %p47_p13 = scmp.ne.s32.totalorder %s3726_s26, %s3722_s25  ;;  %p48_p0 = scmp.eq.s32.totalorder %s3730_s27, 0 }
  0x1f   : > { %p3170_p3 = scmp.lt.s32.totalorder %s3730_s27, 2  ;;  %s5198_s22 = sand.u32 1, %s3726_s26  }
  0x20   : > { %s3844_s20 = scalar_select %p38_p12, %s3726_s26, %s40_s19  }
  0x21   : > { %p49_p5 = por %p48_p0, %p47_p13  ;;  %p3848_p7 = por %p197_p2, %p47_p13 }
  0x22   : > { %5216 = sst [smem:[#allocation23_spill]] %s3844_s20  ;;  %s3854_s23 = sshll.u32 %s3730_s27, 7 }
  0x23   : > { %s3858_s29 = sshll.u32 %s5198_s22, 7  ;;  %p3860_p9 = pnand %p3170_p3, %p49_p5 }
  0x24   : > { %s5199_s10 = sand.u32 1, %s3730_s27   ;;  %s5219_s1 = sld [smem:[#allocation52_spill]] }
  0x25   : > { %s292_s16 = scalar_lea.vmem [#allocation5], %s3858_s29  ;;  %s3872_s19 = scalar_lea.sflag [#allocation6], %s5199_s10 }
  0x26   : > { %s300_s17 = sshll.u32 %s292_s16, 4  ;;  %p3504_p10 = pneg %p3860_p9  ;;  %s301_s17 = int_to_ptr.vmem [resolvable:$true] %s300_s17 }
  0x2a   : > { %s297_s14 = scalar_lea.hbm %s5219_s1, %s3854_s23  ;;  %s3507_s16 = scalar_lea.hbm %s5219_s1, 256 }
  0x2b   : > { %s298_s18 = sshll.u32 %s297_s14, 4  ;;  %s299_s18 = int_to_ptr.hbm [resolvable:$true] %s298_s18 }
  0x2c   : > { %s3500_s22 = sshra.s32 %s299_s18, 4  ;;  %s3501_s22 = int_to_ptr.hbm [resolvable:$true] %s3500_s22 }
  0x2d   : > { %s3502_s4 = scalar_lea.hbm %s3501_s22, 128  ;;  %p3508_p0 = scmp.lt.s32.totalorder %s3501_s22, %s5219_s1 }
  0x2e   : > { %p3503_p2 = scmp.ne.s32.totalorder %s3501_s22, %s3502_s4  ;;  %p3509_p3 = scmp.lt.s32.totalorder %s3507_s16, %s3502_s4 }
  0x30   : > { %p3505_p12 = pnand %p3504_p10, %p3503_p2  ;;  %p3510_p5 = por %p3509_p3, %p3508_p0 }
  0x32   : > { %p3506_p13 = pneg %p3505_p12 }
  0x34   : > { %p3511_p11 = pnand %p3510_p5, %p3506_p13 }
  0x36   : > { %3514 = shalt.err (!%p3511_p11)
}
  0x37   : > { %s5204_s10 = smov 128   ;;  %s3736_s15 = smov 8  }
  0x38   : > { %3155 = dma.hbm_to_vmem [thread:$0]  (!%p3860_p9), %s299_s18, 2048, %s301_s17, %s3872_s19, %s5204_s10, %s5204_s10, %s3736_s15  }
  0x39   : > { %s5220_s0 = sld [smem:[#allocation51_spill]]  ;;  %s270_s22 = scalar_lea.vmem [#allocation2], %s3858_s29 }
  0x3a   : > { %s278_s13 = sshll.u32 %s270_s22, 4  ;;  %s5221_s14 = sand.u32 1, %s3726_s26   ;;  %s279_s13 = int_to_ptr.vmem [resolvable:$true] %s278_s13 }
  0x3b   : > { %s267_s1 = scalar_lea.sflag [#allocation3], %s5221_s14 }
  0x3f   : > { %s275_s4 = scalar_lea.hbm %s5220_s0, %s3854_s23  ;;  %s3537_s11 = scalar_lea.hbm %s5220_s0, 256 }
  0x40   : > { %s276_s16 = sshll.u32 %s275_s4, 4  ;;  %s277_s16 = int_to_ptr.hbm [resolvable:$true] %s276_s16 }
  0x41   : > { %s3530_s8 = sshra.s32 %s277_s16, 4  ;;  %s3531_s8 = int_to_ptr.hbm [resolvable:$true] %s3530_s8 }
  0x42   : > { %s3532_s24 = scalar_lea.hbm %s3531_s8, 128  ;;  %p3538_p13 = scmp.lt.s32.totalorder %s3531_s8, %s5220_s0 }
  0x43   : > { %p3533_p11 = scmp.ne.s32.totalorder %s3531_s8, %s3532_s24  ;;  %p3539_p0 = scmp.lt.s32.totalorder %s3537_s11, %s3532_s24 }
  0x45   : > { %p3535_p2 = pnand %p3533_p11, %p3504_p10  ;;  %p3540_p3 = por %p3539_p0, %p3538_p13 }
  0x47   : > { %p3536_p12 = pneg %p3535_p2 }
  0x49   : > { %p3541_p5 = pnand %p3540_p3, %p3536_p12 }
  0x4b   : > { %3544 = shalt.err (!%p3541_p5)
}
  0x4c   : > { %s5222_s4 = smov 128   ;;  %s319_s17 = scalar_lea.hbm %s5192_s2, %s3854_s23 }
  0x4d   : > { %3152 = dma.hbm_to_vmem [thread:$0]  (!%p3860_p9), %s277_s16, 2048, %s279_s13, %s267_s1, %s5222_s4, %s5222_s4, %s3736_s15  }
  0x4e   : > { %s314_s18 = scalar_lea.vmem [#allocation7], %s3858_s29  ;;  %s320_s8 = sshll.u32 %s319_s17, 4  ;;  %s321_s8 = int_to_ptr.hbm [resolvable:$true] %s320_s8 }
  0x4f   : > { %s322_s10 = sshll.u32 %s314_s18, 4  ;;  %s3560_s24 = sshra.s32 %s321_s8, 4  ;;  %s323_s10 = int_to_ptr.vmem [resolvable:$true] %s322_s10  ;;  %s3561_s24 = int_to_ptr.hbm [resolvable:$true] %s3560_s24 }
  0x50   : > { %s3562_s11 = scalar_lea.hbm %s3561_s24, 128  ;;  %s3567_s1 = scalar_lea.hbm %s5192_s2, 256 }
  0x51   : > { %p3563_p11 = scmp.ne.s32.totalorder %s3561_s24, %s3562_s11  ;;  %p3568_p13 = scmp.lt.s32.totalorder %s3561_s24, %s5192_s2 }
  0x52   : > { %p3569_p0 = scmp.lt.s32.totalorder %s3567_s1, %s3562_s11 }
  0x53   : > { %p3565_p2 = pnand %p3563_p11, %p3504_p10 }
  0x54   : > { %p3570_p3 = por %p3569_p0, %p3568_p13 }
  0x55   : > { %p3566_p12 = pneg %p3565_p2 }
  0x57   : > { %p3571_p5 = pnand %p3570_p3, %p3566_p12 }
  0x59   : > { %3574 = shalt.err (!%p3571_p5)
}
  0x5a   : > { %3158 = dma.hbm_to_vmem [thread:$0]  (!%p3860_p9), %s321_s8, 2048, %s323_s10, %s3872_s19, %s5222_s4, %s5222_s4, %s3736_s15  }
  0x5b   : > { %s341_s14 = scalar_lea.hbm %s5193_s3, %s3854_s23  ;;  %s336_s17 = scalar_lea.vmem [#allocation8], %s3858_s29 }
  0x5c   : > { %s344_s18 = sshll.u32 %s336_s17, 4  ;;  %s342_s24 = sshll.u32 %s341_s14, 4  ;;  %s345_s18 = int_to_ptr.vmem [resolvable:$true] %s344_s18  ;;  %s343_s24 = int_to_ptr.hbm [resolvable:$true] %s342_s24 }
  0x5d   : > { %s5223_s11 = sand.u32 1, %s3730_s27   ;;  %s3590_s1 = sshra.s32 %s343_s24, 4  ;;  %s3591_s1 = int_to_ptr.hbm [resolvable:$true] %s3590_s1 }
  0x5e   : > { %s333_s20 = scalar_lea.sflag [#allocation9], %s5223_s11  ;;  %s3592_s13 = scalar_lea.hbm %s3591_s1, 128 }
  0x5f   : > { %p3593_p11 = scmp.ne.s32.totalorder %s3591_s1, %s3592_s13  ;;  %s3597_s8 = scalar_lea.hbm %s5193_s3, 256 }
  0x60   : > { %p3598_p13 = scmp.lt.s32.totalorder %s3591_s1, %s5193_s3  ;;  %p3599_p0 = scmp.lt.s32.totalorder %s3597_s8, %s3592_s13 }
  0x61   : > { %p3595_p2 = pnand %p3593_p11, %p3504_p10 }
  0x62   : > { %p3600_p3 = por %p3599_p0, %p3598_p13 }
  0x63   : > { %p3596_p12 = pneg %p3595_p2 }
  0x65   : > { %p3601_p5 = pnand %p3600_p3, %p3596_p12 }
  0x67   : > { %3604 = shalt.err (!%p3601_p5)
}
  0x68   : > { %3161 = dma.hbm_to_vmem [thread:$0]  (!%p3860_p9), %s343_s24, 2048, %s345_s18, %s333_s20, %s5222_s4, %s5222_s4, %s3736_s15  }
  0x69   : > { %356 = sbr.rel (%p3824_p8) target bundleno = 708 (0x2c4), region = 44 }
  0x6e   : > { %s3956_s16 = sand.u32 1, %s3722_s25  }
  0x6f   : > { %s3959_s0 = sshll.u32 %s3956_s16, 7  ;;  %s359_s22 = scalar_lea.sflag [#allocation3], %s3956_s16 }
  0x70   : > { %s3963_s14 = scalar_lea.vmem [#allocation2], %s3959_s0 }
  0x71   : > { %3693 = dma.done.wait (%p3811_p4), %s359_s22, 2048  }
  0x72   : > { %3695 = vsyncadd (%p3811_p4), %s359_s22, 4294965248  ;;  %s368_s12 = sand.u32 1, %s3802_s28   ;;  %s3971_s9 = scalar_lea.vmem [#allocation5], %s3959_s0 }
  0x73   : > { %s369_s15 = scalar_lea.sflag [#allocation6], %s368_s12 }
  0x74   : > { %3697 = dma.done.wait (%p3811_p4), %s369_s15, 4096  }
  0x75   : > { %3699 = vsyncadd (%p3811_p4), %s369_s15, 4294963200  ;;  %s3978_s4 = scalar_lea.vmem [#allocation7], %s3959_s0  ;;  %s389_s17 = scalar_lea.sflag [#allocation9], %s368_s12 }
  0x76   : > { %s3981_s18 = scalar_lea.vmem [#allocation8], %s3959_s0 }
  0x77   : > { %3701 = dma.done.wait (%p3811_p4), %s389_s17, 2048  }
  0x78   : > { %3703 = vsyncadd (%p3811_p4), %s389_s17, 4294965248 }
  0x79   : > { %3705 = dma.done.wait (%p54_p1), [#allocation9], 8192  }
  0x7a   : > { %3707 = vsyncadd (%p54_p1), [#allocation9], 4294959104  ;;  %v2814_v0 = vld [vmem:[#allocation10 + $0x1e0] sm:$0xf]  ;;  %v3078_v1 = vld [vmem:[#allocation10 + $0x1ec] sm:$0xf0] }
  0x7b   : > { %v3076_v2 = vld [vmem:[#allocation10 + $0x1e4] sm:$0xf]  ;;  %v2815_v3 = vor.u32 %v3078_v1, %v2814_v0  ;;  %v2816_v4 = vld [vmem:[#allocation10 + $0x1f0] sm:$0xf0]  ;;  %v2822_v5 = vld [vmem:[#allocation10 + $0x1e8] sm:$0xf] }
  0x7c   : > { %v3079_v6 = vld [vmem:[#allocation10 + $0x1f4] sm:$0xf0]  ;;  %v2819_v7 = vor.u32 %v3076_v2, %v2816_v4  ;;  %v3077_v9 = vld [vmem:[#allocation10 + $0x1ec] sm:$0xf]  ;;  %v2824_v10 = vld [vmem:[#allocation10 + $0x1f8] sm:$0xf0] }
  0x7d   : > { %v2823_v8 = vor.u32 %v3079_v6, %v2822_v5  ;;  %v2798_v11 = vld [vmem:[#allocation10 + $0x1c0] sm:$0xf]  ;;  %727 = vmatpush.bf16.msra.mxu0 %v2815_v3  ;;  %v2827_v12 = vor.u32 %v3077_v9, %v2824_v10  ;;  %v3074_v13 = vld [vmem:[#allocation10 + $0x1cc] sm:$0xf0]  ;;  %v3072_v14 = vld [vmem:[#allocation10 + $0x1c4] sm:$0xf] }
  0x7e   : > { %v2800_v15 = vld [vmem:[#allocation10 + $0x1d0] sm:$0xf0]  ;;  %776 = vmatpush.bf16.msra.mxu1 %v2819_v7  ;;  %v2799_v16 = vor.u32 %v3074_v13, %v2798_v11  ;;  %v2806_v18 = vld [vmem:[#allocation10 + $0x1c8] sm:$0xf]  ;;  %v3075_v19 = vld [vmem:[#allocation10 + $0x1d4] sm:$0xf0] }
  0x7f   : > { %825 = vmatpush.bf16.msra.mxu2 %v2823_v8  ;;  %v2803_v17 = vor.u32 %v3072_v14, %v2800_v15  ;;  %v3073_v20 = vld [vmem:[#allocation10 + $0x1cc] sm:$0xf]  ;;  %874 = vmatpush.bf16.msra.mxu3 %v2827_v12  ;;  %v2807_v21 = vor.u32 %v3075_v19, %v2806_v18  ;;  %v2808_v22 = vld [vmem:[#allocation10 + $0x1d8] sm:$0xf0]  ;;  %v2782_v23 = vld [vmem:[#allocation10 + $0x1a0] sm:$0xf] }
  0x80   : > { %v3070_v24 = vld [vmem:[#allocation10 + $0x1ac] sm:$0xf0]  ;;  %v2811_v25 = vor.u32 %v3073_v20, %v2808_v22  ;;  %v3068_v26 = vld [vmem:[#allocation10 + $0x1a4] sm:$0xf]  ;;  %v2784_v27 = vld [vmem:[#allocation10 + $0x1b0] sm:$0xf0] }
  0x81   : > { %v2790_v28 = vld [vmem:[#allocation10 + $0x1a8] sm:$0xf]  ;;  %728 = vmatpush.bf16.msra.mxu0 %v2799_v16  ;;  %v2783_v29 = vor.u32 %v3070_v24, %v2782_v23  ;;  %v3071_v30 = vld [vmem:[#allocation10 + $0x1b4] sm:$0xf0]  ;;  %v3069_v31 = vld [vmem:[#allocation10 + $0x1ac] sm:$0xf]  ;;  %v2787_v33 = vor.u32 %v3068_v26, %v2784_v27 }
  0x82   : > { %v2792_v32 = vld [vmem:[#allocation10 + $0x1b8] sm:$0xf0]  ;;  %777 = vmatpush.bf16.msra.mxu1 %v2803_v17  ;;  %v2791_v34 = vor.u32 %v3071_v30, %v2790_v28  ;;  %v2766_v35 = vld [vmem:[#allocation10 + $0x180] sm:$0xf]  ;;  %v3066_v36 = vld [vmem:[#allocation10 + $0x18c] sm:$0xf0] }
  0x83   : > { %826 = vmatpush.bf16.msra.mxu2 %v2807_v21  ;;  %v3064_v37 = vld [vmem:[#allocation10 + $0x184] sm:$0xf]  ;;  %875 = vmatpush.bf16.msra.mxu3 %v2811_v25  ;;  %v2795_v38 = vor.u32 %v3069_v31, %v2792_v32  ;;  %v2768_v39 = vld [vmem:[#allocation10 + $0x190] sm:$0xf0]  ;;  %v2774_v40 = vld [vmem:[#allocation10 + $0x188] sm:$0xf]  ;;  %v2767_v44 = vor.u32 %v3066_v36, %v2766_v35 }
  0x84   : > { %v3067_v41 = vld [vmem:[#allocation10 + $0x194] sm:$0xf0]  ;;  %v3065_v42 = vld [vmem:[#allocation10 + $0x18c] sm:$0xf]  ;;  %v2776_v43 = vld [vmem:[#allocation10 + $0x198] sm:$0xf0]  ;;  %v2771_v45 = vor.u32 %v3064_v37, %v2768_v39 }
  0x85   : > { %729 = vmatpush.bf16.msra.mxu0 %v2783_v29  ;;  %v2775_v46 = vor.u32 %v3067_v41, %v2774_v40  ;;  %v2750_v47 = vld [vmem:[#allocation10 + $0x160] sm:$0xf]  ;;  %v3062_v48 = vld [vmem:[#allocation10 + $0x16c] sm:$0xf0]  ;;  %v3060_v49 = vld [vmem:[#allocation10 + $0x164] sm:$0xf]  ;;  %v2779_v50 = vor.u32 %v3065_v42, %v2776_v43 }
  0x86   : > { %778 = vmatpush.bf16.msra.mxu1 %v2787_v33  ;;  %v2752_v51 = vld [vmem:[#allocation10 + $0x170] sm:$0xf0]  ;;  %v2758_v52 = vld [vmem:[#allocation10 + $0x168] sm:$0xf]  ;;  %v3063_v53 = vld [vmem:[#allocation10 + $0x174] sm:$0xf0]  ;;  %v2751_v56 = vor.u32 %v3062_v48, %v2750_v47 }
  0x87   : > { %827 = vmatpush.bf16.msra.mxu2 %v2791_v34  ;;  %876 = vmatpush.bf16.msra.mxu3 %v2795_v38  ;;  %v3061_v54 = vld [vmem:[#allocation10 + $0x16c] sm:$0xf]  ;;  %v2760_v55 = vld [vmem:[#allocation10 + $0x178] sm:$0xf0]  ;;  %v2755_v57 = vor.u32 %v3060_v49, %v2752_v51  ;;  %v2759_v58 = vor.u32 %v3063_v53, %v2758_v52  ;;  %v2734_v59 = vld [vmem:[#allocation10 + $0x140] sm:$0xf] }
  0x88   : > { %v3058_v60 = vld [vmem:[#allocation10 + $0x14c] sm:$0xf0]  ;;  %v3056_v61 = vld [vmem:[#allocation10 + $0x144] sm:$0xf]  ;;  %v2763_v62 = vor.u32 %v3061_v54, %v2760_v55  ;;  %v2736_v63 = vld [vmem:[#allocation10 + $0x150] sm:$0xf0] }
  0x89   : > { %730 = vmatpush.bf16.msra.mxu0 %v2767_v44  ;;  %v2742_v0 = vld [vmem:[#allocation10 + $0x148] sm:$0xf]  ;;  %v3059_v1 = vld [vmem:[#allocation10 + $0x154] sm:$0xf0]  ;;  %v3057_v2 = vld [vmem:[#allocation10 + $0x14c] sm:$0xf]  ;;  %v2735_v4 = vor.u32 %v3058_v60, %v2734_v59  ;;  %v2739_v5 = vor.u32 %v3056_v61, %v2736_v63 }
  0x8a   : > { %779 = vmatpush.bf16.msra.mxu1 %v2771_v45  ;;  %v2744_v3 = vld [vmem:[#allocation10 + $0x158] sm:$0xf0]  ;;  %v2743_v6 = vor.u32 %v3059_v1, %v2742_v0  ;;  %v2718_v7 = vld [vmem:[#allocation10 + $0x120] sm:$0xf]  ;;  %v3054_v8 = vld [vmem:[#allocation10 + $0x12c] sm:$0xf0] }
  0x8b   : > { %828 = vmatpush.bf16.msra.mxu2 %v2775_v46  ;;  %877 = vmatpush.bf16.msra.mxu3 %v2779_v50  ;;  %v3052_v9 = vld [vmem:[#allocation10 + $0x124] sm:$0xf]  ;;  %v2747_v10 = vor.u32 %v3057_v2, %v2744_v3  ;;  %v2720_v11 = vld [vmem:[#allocation10 + $0x130] sm:$0xf0]  ;;  %v2726_v12 = vld [vmem:[#allocation10 + $0x128] sm:$0xf]  ;;  %v2719_v16 = vor.u32 %v3054_v8, %v2718_v7 }
  0x8c   : > { %v3055_v13 = vld [vmem:[#allocation10 + $0x134] sm:$0xf0]  ;;  %v3053_v14 = vld [vmem:[#allocation10 + $0x12c] sm:$0xf]  ;;  %v2728_v15 = vld [vmem:[#allocation10 + $0x138] sm:$0xf0]  ;;  %v2723_v19 = vor.u32 %v3052_v9, %v2720_v11 }
  0x8d   : > { %731 = vmatpush.bf16.msra.mxu0 %v2751_v56  ;;  %v2702_v17 = vld [vmem:[#allocation10 + $0x100] sm:$0xf]  ;;  %v3050_v18 = vld [vmem:[#allocation10 + $0x10c] sm:$0xf0]  ;;  %v2727_v20 = vor.u32 %v3055_v13, %v2726_v12  ;;  %v3048_v21 = vld [vmem:[#allocation10 + $0x104] sm:$0xf]  ;;  %v2731_v24 = vor.u32 %v3053_v14, %v2728_v15 }
  0x8e   : > { %780 = vmatpush.bf16.msra.mxu1 %v2755_v57  ;;  %v2704_v22 = vld [vmem:[#allocation10 + $0x110] sm:$0xf0]  ;;  %v2710_v23 = vld [vmem:[#allocation10 + $0x108] sm:$0xf]  ;;  %v3051_v25 = vld [vmem:[#allocation10 + $0x114] sm:$0xf0]  ;;  %v2703_v31 = vor.u32 %v3050_v18, %v2702_v17 }
  0x8f   : > { %829 = vmatpush.bf16.msra.mxu2 %v2759_v58  ;;  %878 = vmatpush.bf16.msra.mxu3 %v2763_v62  ;;  %v3049_v26 = vld [vmem:[#allocation10 + $0x10c] sm:$0xf]  ;;  %v2712_v27 = vld [vmem:[#allocation10 + $0x118] sm:$0xf0]  ;;  %v479_v28 = vld [vmem:[%s3981_s18] sm:$0xff]  ;;  %v2707_v35 = vor.u32 %v3048_v21, %v2704_v22  ;;  %v2711_v36 = vor.u32 %v3051_v25, %v2710_v23  ;;  %s4278_s11 = scalar_lea.vmem [#allocation11], %s3959_s0 }
  0x90   : > { %v2950_v29 = vld [vmem:[#allocation10 + $0xe8] sm:$0xf]  ;;  %v3047_v30 = vld [vmem:[#allocation10 + $0xf4] sm:$0xf0]  ;;  %v3044_v33 = vld [vmem:[#allocation10 + $0xe4] sm:$0xf]  ;;  %v2715_v37 = vor.u32 %v3049_v26, %v2712_v27 }
  0x91   : > { %732 = vmatpush.bf16.msra.mxu0 %v2735_v4  ;;  %v480_v32 = vld [vmem:[%s3981_s18 + $0x8] sm:$0xff]  ;;  %v2944_v34 = vld [vmem:[#allocation10 + $0xf0] sm:$0xf0]  ;;  %v2951_v38 = vor.u32 %v3047_v30, %v2950_v29  ;;  %v2942_v39 = vld [vmem:[#allocation10 + $0xe0] sm:$0xf]  ;;  %s2699_s20 = sshll.u32 %s3956_s16, 6 }
  0x92   : > { %781 = vmatpush.bf16.msra.mxu1 %v2739_v5  ;;  %v3046_v40 = vld [vmem:[#allocation10 + $0xec] sm:$0xf0]  ;;  %v2934_v41 = vld [vmem:[#allocation10 + $0xc8] sm:$0xf]  ;;  %v495_v42 = vpack.c.bf16 %v480_v32, %v479_v28  ;;  %v2947_v43 = vor.u32 %v3044_v33, %v2944_v34  ;;  %v3043_v44 = vld [vmem:[#allocation10 + $0xd4] sm:$0xf0] }
  0x93   : > { %830 = vmatpush.bf16.msra.mxu2 %v2743_v6  ;;  %879 = vmatpush.bf16.msra.mxu3 %v2747_v10  ;;  %v3045_v45 = vld [vmem:[#allocation10 + $0xec] sm:$0xf]  ;;  %v2952_v46 = vld [vmem:[#allocation10 + $0xf8] sm:$0xf0]  ;;  %v3040_v47 = vld [vmem:[#allocation10 + $0xc4] sm:$0xf]  ;;  %v2943_v49 = vor.u32 %v3046_v40, %v2942_v39  ;;  %v2935_v50 = vor.u32 %v3043_v44, %v2934_v41 }
  0x94   : > { %v2928_v48 = vld [vmem:[#allocation10 + $0xd0] sm:$0xf0]  ;;  %v2955_v51 = vor.u32 %v3045_v45, %v2952_v46  ;;  %v2926_v52 = vld [vmem:[#allocation10 + $0xc0] sm:$0xf]  ;;  %v3042_v53 = vld [vmem:[#allocation10 + $0xcc] sm:$0xf0] }
  0x95   : > { %733 = vmatpush.bf16.msra.mxu0 %v2719_v16  ;;  %v2931_v54 = vor.u32 %v3040_v47, %v2928_v48  ;;  %v2927_v55 = vor.u32 %v3042_v53, %v2926_v52  ;;  %v2918_v56 = vld [vmem:[#allocation10 + $0xa8] sm:$0xf]  ;;  %v3039_v57 = vld [vmem:[#allocation10 + $0xb4] sm:$0xf0]  ;;  %v3041_v58 = vld [vmem:[#allocation10 + $0xcc] sm:$0xf] }
  0x96   : > { %782 = vmatpush.bf16.msra.mxu1 %v2723_v19  ;;  %v2919_v59 = vor.u32 %v3039_v57, %v2918_v56  ;;  %v2936_v60 = vld [vmem:[#allocation10 + $0xd8] sm:$0xf0]  ;;  %v2910_v61 = vld [vmem:[#allocation10 + $0xa0] sm:$0xf]  ;;  %v3038_v62 = vld [vmem:[#allocation10 + $0xac] sm:$0xf0] }
  0x97   : > { %831 = vmatpush.bf16.msra.mxu2 %v2727_v20  ;;  %880 = vmatpush.bf16.msra.mxu3 %v2731_v24  ;;  %v2939_v63 = vor.u32 %v3041_v58, %v2936_v60  ;;  %v3036_v0 = vld [vmem:[#allocation10 + $0xa4] sm:$0xf]  ;;  %v2912_v1 = vld [vmem:[#allocation10 + $0xb0] sm:$0xf0]  ;;  %v2911_v3 = vor.u32 %v3038_v62, %v2910_v61  ;;  %v482_v5 = vld [vmem:[%s3981_s18 + $0x18] sm:$0xff]  ;;  %s4376_s1 = scalar_lea.vmem [#allocation12], %s2699_s20 }
  0x98   : > { %v2915_v2 = vor.u32 %v3036_v0, %v2912_v1  ;;  %v481_v4 = vld [vmem:[%s3981_s18 + $0x10] sm:$0xff]  ;;  %v2902_v7 = vld [vmem:[#allocation10 + $0x88] sm:$0xf]  ;;  %v3035_v8 = vld [vmem:[#allocation10 + $0x94] sm:$0xf0]  ;;  %s3080_s13 = sshll.u32 %s3802_s28, 7 }
  0x99   : > { %734 = vmatpush.bf16.msra.mxu0 %v2703_v31  ;;  %v496_v6 = vpack.c.bf16 %v482_v5, %v481_v4  ;;  %v3037_v9 = vld [vmem:[#allocation10 + $0xac] sm:$0xf]  ;;  %v2903_v10 = vor.u32 %v3035_v8, %v2902_v7  ;;  %v2920_v11 = vld [vmem:[#allocation10 + $0xb8] sm:$0xf0]  ;;  %v2894_v12 = vld [vmem:[#allocation10 + $0x80] sm:$0xf]  ;;  %s2474_s8 = scalar_lea.hbm %s5196_s6, %s3080_s13 }
  0x9a   : > { %783 = vmatpush.bf16.msra.mxu1 %v2707_v35  ;;  %v3034_v13 = vld [vmem:[#allocation10 + $0x8c] sm:$0xf0]  ;;  %v2923_v14 = vor.u32 %v3037_v9, %v2920_v11  ;;  %v3032_v16 = vld [vmem:[#allocation10 + $0x84] sm:$0xf]  ;;  %v2896_v17 = vld [vmem:[#allocation10 + $0x90] sm:$0xf0] }
  0x9b   : > { %832 = vmatpush.bf16.msra.mxu2 %v2711_v36  ;;  %881 = vmatpush.bf16.msra.mxu3 %v2715_v37  ;;  %v2895_v15 = vor.u32 %v3034_v13, %v2894_v12  ;;  %v2899_v18 = vor.u32 %v3032_v16, %v2896_v17  ;;  %v483_v19 = vld [vmem:[%s3981_s18 + $0x20] sm:$0xff]  ;;  %v484_v20 = vld [vmem:[%s3981_s18 + $0x28] sm:$0xff]  ;;  %v3031_v23 = vld [vmem:[#allocation10 + $0x74] sm:$0xf0]  ;;  %s2475_s23 = sshll.u32 %s4278_s11, 4  ;;  %s2477_s29 = sshll.u32 %s2474_s8, 4  ;;  %s2476_s23 = int_to_ptr.vmem [resolvable:$true] %s2475_s23  ;;  %s2478_s29 = int_to_ptr.hbm [resolvable:$true] %s2477_s29 }
  0x9c   : > { %735 = vmatmul.bf16.vlgmr.msra.gmra.mxu0 %v495_v42  ;;  %v497_v21 = vpack.c.bf16 %v484_v20, %v483_v19  ;;  %v2886_v22 = vld [vmem:[#allocation10 + $0x68] sm:$0xf]  ;;  %v3033_v24 = vld [vmem:[#allocation10 + $0x8c] sm:$0xf]  ;;  %v2904_v26 = vld [vmem:[#allocation10 + $0x98] sm:$0xf0] }
  0x9d   : > { %784 = vmatmul.bf16.vlgmr.msra.gmra.mxu1 %v495_v42  ;;  %1083 = vmatpush.bf16.msrb.mxu0 %v2943_v49  ;;  %v2887_v25 = vor.u32 %v3031_v23, %v2886_v22  ;;  %v2878_v27 = vld [vmem:[#allocation10 + $0x60] sm:$0xf]  ;;  %v3030_v28 = vld [vmem:[#allocation10 + $0x6c] sm:$0xf0]  ;;  %v2907_v29 = vor.u32 %v3033_v24, %v2904_v26  ;;  %v3028_v31 = vld [vmem:[#allocation10 + $0x64] sm:$0xf] }
  0x9e   : > { %1132 = vmatpush.bf16.msrb.mxu1 %v2947_v43  ;;  %833 = vmatmul.bf16.vlgmr.msra.gmra.mxu2 %v495_v42  ;;  %v2879_v30 = vor.u32 %v3030_v28, %v2878_v27  ;;  %v2880_v32 = vld [vmem:[#allocation10 + $0x70] sm:$0xf0]  ;;  %v486_v35 = vld [vmem:[%s3981_s18 + $0x38] sm:$0xff]  ;;  %v2870_v37 = vld [vmem:[#allocation10 + $0x48] sm:$0xf]  ;;  %s3081_s0 = sshll.u32 %s3802_s28, 6 }
  0x9f   : > { %1181 = vmatpush.bf16.msrb.mxu2 %v2951_v38  ;;  %882 = vmatmul.bf16.vlgmr.msra.gmra.mxu3 %v495_v42  ;;  %v2883_v33 = vor.u32 %v3028_v31, %v2880_v32  ;;  %v485_v34 = vld [vmem:[%s3981_s18 + $0x30] sm:$0xff]  ;;  %v3027_v38 = vld [vmem:[#allocation10 + $0x54] sm:$0xf0]  ;;  %v3029_v39 = vld [vmem:[#allocation10 + $0x6c] sm:$0xf]  ;;  %s2491_s12 = scalar_lea.hbm %s5197_s7, %s3081_s0  ;;  %s2458_s15 = scalar_lea.sflag [#allocation4], %s3956_s16 }
  0xa0   : > { %1230 = vmatpush.bf16.msrb.mxu3 %v2955_v51  ;;  %v498_v36 = vpack.c.bf16 %v486_v35, %v485_v34  ;;  %v2871_v40 = vor.u32 %v3027_v38, %v2870_v37  ;;  %v2888_v41 = vld [vmem:[#allocation10 + $0x78] sm:$0xf0]  ;;  %v2862_v42 = vld [vmem:[#allocation10 + $0x40] sm:$0xf]  ;;  %v3026_v43 = vld [vmem:[#allocation10 + $0x4c] sm:$0xf0] }
  0xa1   : > { %1084 = vmatpush.bf16.msrb.mxu0 %v2927_v55  ;;  %v2891_v44 = vor.u32 %v3029_v39, %v2888_v41  ;;  %v2863_v45 = vor.u32 %v3026_v43, %v2862_v42  ;;  %v3024_v46 = vld [vmem:[#allocation10 + $0x44] sm:$0xf]  ;;  %v2864_v47 = vld [vmem:[#allocation10 + $0x50] sm:$0xf0]  ;;  %v2854_v52 = vld [vmem:[#allocation10 + $0x28] sm:$0xf] }
  0xa2   : > { %1133 = vmatpush.bf16.msrb.mxu1 %v2931_v54  ;;  %v2867_v48 = vor.u32 %v3024_v46, %v2864_v47  ;;  %v487_v49 = vld [vmem:[%s3981_s18 + $0x40] sm:$0xff]  ;;  %v3023_v53 = vld [vmem:[#allocation10 + $0x34] sm:$0xf0]  ;;  %v3025_v54 = vld [vmem:[#allocation10 + $0x4c] sm:$0xf]  ;;  %s3640_s28 = scalar_lea.hbm %s5196_s6, 256 }
  0xa3   : > { %1182 = vmatpush.bf16.msrb.mxu2 %v2935_v50  ;;  %v488_v50 = vld [vmem:[%s3981_s18 + $0x48] sm:$0xff]  ;;  %v2855_v55 = vor.u32 %v3023_v53, %v2854_v52  ;;  %v2872_v56 = vld [vmem:[#allocation10 + $0x58] sm:$0xf0]  ;;  %v2846_v57 = vld [vmem:[#allocation10 + $0x20] sm:$0xf] }
  0xa4   : > { %1231 = vmatpush.bf16.msrb.mxu3 %v2939_v63  ;;  %v499_v51 = vpack.c.bf16 %v488_v50, %v487_v49  ;;  %v3022_v58 = vld [vmem:[#allocation10 + $0x2c] sm:$0xf0]  ;;  %v3020_v61 = vld [vmem:[#allocation10 + $0x24] sm:$0xf]  ;;  %v2848_v62 = vld [vmem:[#allocation10 + $0x30] sm:$0xf0] }
  0xa5   : > { %1085 = vmatpush.bf16.msrb.mxu0 %v2911_v3  ;;  %v2847_v60 = vor.u32 %v3022_v58, %v2846_v57  ;;  %v2851_v63 = vor.u32 %v3020_v61, %v2848_v62  ;;  %v489_v0 = vld [vmem:[%s3981_s18 + $0x50] sm:$0xff]  ;;  %v490_v1 = vld [vmem:[%s3981_s18 + $0x58] sm:$0xff]  ;;  %v2838_v3 = vld [vmem:[#allocation10 + $0x8] sm:$0xf] }
  0xa6   : > { %1134 = vmatpush.bf16.msrb.mxu1 %v2915_v2  ;;  %v500_v2 = vpack.c.bf16 %v490_v1, %v489_v0  ;;  %v3019_v4 = vld [vmem:[#allocation10 + $0x14] sm:$0xf0]  ;;  %v3021_v5 = vld [vmem:[#allocation10 + $0x2c] sm:$0xf]  ;;  %v2856_v7 = vld [vmem:[#allocation10 + $0x38] sm:$0xf0] }
  0xa7   : > { %1183 = vmatpush.bf16.msrb.mxu2 %v2919_v59  ;;  %v2875_v59 = vor.u32 %v3025_v54, %v2872_v56  ;;  %v2830_v8 = vld [vmem:[#allocation10] sm:$0xf]  ;;  %v3018_v9 = vld [vmem:[#allocation10 + $0xc] sm:$0xf0]  ;;  %v3016_v12 = vld [vmem:[#allocation10 + $0x4] sm:$0xf] }
  0xa8   : > { %1232 = vmatpush.bf16.msrb.mxu3 %v2923_v14  ;;  %v2831_v11 = vor.u32 %v3018_v9, %v2830_v8  ;;  %v2832_v13 = vld [vmem:[#allocation10 + $0x10] sm:$0xf0]  ;;  %v492_v16 = vld [vmem:[%s3981_s18 + $0x68] sm:$0xff]  ;;  %v2840_v19 = vld [vmem:[#allocation10 + $0x18] sm:$0xf0] }
  0xa9   : > { %1086 = vmatpush.bf16.msrb.mxu0 %v2895_v15  ;;  %v2835_v14 = vor.u32 %v3016_v12, %v2832_v13  ;;  %v491_v15 = vld [vmem:[%s3981_s18 + $0x60] sm:$0xff]  ;;  %v494_v22 = vld [vmem:[%s3981_s18 + $0x78] sm:$0xff]  ;;  %v465_v13 = vld [vmem:[%s3971_s9 + $0x50] sm:$0xff] }
  0xaa   : > { %1135 = vmatpush.bf16.msrb.mxu1 %v2899_v18  ;;  %v501_v17 = vpack.c.bf16 %v492_v16, %v491_v15  ;;  %v3017_v18 = vld [vmem:[#allocation10 + $0xc] sm:$0xf]  ;;  %v455_v24 = vld [vmem:[%s3971_s9] sm:$0xff]  ;;  %v458_v34 = vld [vmem:[%s3971_s9 + $0x18] sm:$0xff] }
  0xab   : > { %1184 = vmatpush.bf16.msrb.mxu2 %v2903_v10  ;;  %v2859_v10 = vor.u32 %v3021_v5, %v2856_v7  ;;  %v2843_v20 = vor.u32 %v3017_v18, %v2840_v19  ;;  %v462_v56 = vld [vmem:[%s3971_s9 + $0x38] sm:$0xff] }
  0xac   : > { %740 = vmatmul.bf16.gmra.mxu0 %v496_v6  ;;  %1233 = vmatpush.bf16.msrb.mxu3 %v2907_v29 }
  0xad   : > { %789 = vmatmul.bf16.gmra.mxu1 %v496_v6  ;;  %1087 = vmatpush.bf16.msrb.mxu0 %v2879_v30 }
  0xae   : > { %838 = vmatmul.bf16.gmra.mxu2 %v496_v6  ;;  %1136 = vmatpush.bf16.msrb.mxu1 %v2883_v33  ;;  %v457_v33 = vld [vmem:[%s3971_s9 + $0x10] sm:$0xff] }
  0xaf   : > { %887 = vmatmul.bf16.gmra.mxu3 %v496_v6  ;;  %1185 = vmatpush.bf16.msrb.mxu2 %v2887_v25  ;;  %v2839_v6 = vor.u32 %v3019_v4, %v2838_v3  ;;  %v456_v25 = vld [vmem:[%s3971_s9 + $0x8] sm:$0xff] }
  0xb0   : > { %1234 = vmatpush.bf16.msrb.mxu3 %v2891_v44  ;;  %v471_v26 = vpack.c.bf16 %v456_v25, %v455_v24  ;;  %v459_v44 = vld [vmem:[%s3971_s9 + $0x20] sm:$0xff]  ;;  %v464_v3 = vld [vmem:[%s3971_s9 + $0x48] sm:$0xff] }
  0xb1   : > { %1088 = vmatpush.bf16.msrb.mxu0 %v2863_v45  ;;  %v460_v45 = vld [vmem:[%s3971_s9 + $0x28] sm:$0xff]  ;;  %v467_v24 = vld [vmem:[%s3971_s9 + $0x60] sm:$0xff] }
  0xb2   : > { %1137 = vmatpush.bf16.msrb.mxu1 %v2867_v48  ;;  %v473_v47 = vpack.c.bf16 %v460_v45, %v459_v44  ;;  %v468_v25 = vld [vmem:[%s3971_s9 + $0x68] sm:$0xff] }
  0xb3   : > { %1186 = vmatpush.bf16.msrb.mxu2 %v2871_v40 }
  0xb4   : > { %1235 = vmatpush.bf16.msrb.mxu3 %v2875_v59 }
  0xb5   : > { %1089 = vmatpush.bf16.msrb.mxu0 %v2847_v60 }
  0xb6   : > { %1138 = vmatpush.bf16.msrb.mxu1 %v2851_v63 }
  0xb7   : > { %1187 = vmatpush.bf16.msrb.mxu2 %v2855_v55  ;;  %v461_v55 = vld [vmem:[%s3971_s9 + $0x30] sm:$0xff] }
  0xb8   : > { %1236 = vmatpush.bf16.msrb.mxu3 %v2859_v10  ;;  %v474_v58 = vpack.c.bf16 %v462_v56, %v461_v55 }
  0xb9   : > { %1090 = vmatpush.bf16.msrb.mxu0 %v2831_v11 }
  0xba   : > { %1139 = vmatpush.bf16.msrb.mxu1 %v2835_v14  ;;  %v466_v14 = vld [vmem:[%s3971_s9 + $0x58] sm:$0xff] }
  0xbb   : > { %1188 = vmatpush.bf16.msrb.mxu2 %v2839_v6  ;;  %v476_v16 = vpack.c.bf16 %v466_v14, %v465_v13 }
  0xbc   : > { %745 = vmatmul.bf16.gmra.mxu0 %v497_v21  ;;  %1237 = vmatpush.bf16.msrb.mxu3 %v2843_v20 }
  0xbd   : > { %794 = vmatmul.bf16.gmra.mxu1 %v497_v21 }
  0xbe   : > { %843 = vmatmul.bf16.gmra.mxu2 %v497_v21 }
  0xbf   : > { %892 = vmatmul.bf16.gmra.mxu3 %v497_v21  ;;  %v493_v21 = vld [vmem:[%s3981_s18 + $0x70] sm:$0xff] }
  0xc0   : > { %v502_v23 = vpack.c.bf16 %v494_v22, %v493_v21 }
  0xcc   : > { %750 = vmatmul.bf16.gmra.mxu0 %v498_v36 }
  0xcd   : > { %799 = vmatmul.bf16.gmra.mxu1 %v498_v36 }
  0xce   : > { %848 = vmatmul.bf16.gmra.mxu2 %v498_v36 }
  0xcf   : > { %897 = vmatmul.bf16.gmra.mxu3 %v498_v36  ;;  %v472_v36 = vpack.c.bf16 %v458_v34, %v457_v33  ;;  %v477_v33 = vpack.c.bf16 %v468_v25, %v467_v24 }
  0xdc   : > { %755 = vmatmul.bf16.gmra.mxu0 %v499_v51 }
  0xdd   : > { %804 = vmatmul.bf16.gmra.mxu1 %v499_v51 }
  0xde   : > { %853 = vmatmul.bf16.gmra.mxu2 %v499_v51 }
  0xdf   : > { %902 = vmatmul.bf16.gmra.mxu3 %v499_v51 }
  0xec   : > { %760 = vmatmul.bf16.gmra.mxu0 %v500_v2 }
  0xed   : > { %809 = vmatmul.bf16.gmra.mxu1 %v500_v2 }
  0xee   : > { %858 = vmatmul.bf16.gmra.mxu2 %v500_v2 }
  0xef   : > { %907 = vmatmul.bf16.gmra.mxu3 %v500_v2  ;;  %v463_v2 = vld [vmem:[%s3971_s9 + $0x40] sm:$0xff] }
  0xf0   : > { %v475_v5 = vpack.c.bf16 %v464_v3, %v463_v2  ;;  %v470_v2 = vld [vmem:[%s3971_s9 + $0x78] sm:$0xff] }
  0xfc   : > { %765 = vmatmul.bf16.gmra.mxu0 %v501_v17 }
  0xfd   : > { %814 = vmatmul.bf16.gmra.mxu1 %v501_v17 }
  0xfe   : > { %863 = vmatmul.bf16.gmra.mxu2 %v501_v17 }
  0xff   : > { %912 = vmatmul.bf16.gmra.mxu3 %v501_v17 }
 0x10c   : > { %770 = vmatmul.bf16.gmra.mxu0 %v502_v23 }
 0x10d   : > { %819 = vmatmul.bf16.gmra.mxu1 %v502_v23 }
 0x10e   : > { %868 = vmatmul.bf16.gmra.mxu2 %v502_v23 }
 0x10f   : > { %917 = vmatmul.bf16.gmra.mxu3 %v502_v23 }
 0x119   : > { %v4009_v27 = vpop.f32.mrf.mxu0 }
 0x11a   : > { %v4011_v28 = vpop.f32.mrf.mxu1 }
 0x11c   : > { %1091 = vmatmul.bf16.vlgmr.msrb.gmra.mxu0 %v471_v26 }
 0x11d   : > { %1140 = vmatmul.bf16.vlgmr.msrb.gmra.mxu1 %v471_v26 }
 0x11e   : > { %1189 = vmatmul.bf16.vlgmr.msrb.gmra.mxu2 %v471_v26 }
 0x11f   : > { %1238 = vmatmul.bf16.vlgmr.msrb.gmra.mxu3 %v471_v26 }
 0x121   : > { %v4013_v29 = vpop.f32.mrf.mxu2  ;;  %v4017_v31 = vpop.f32.mrf.mxu0 }
 0x122   : > { %v4015_v30 = vpop.f32.mrf.mxu3  ;;  %v4019_v32 = vpop.f32.mrf.mxu1 }
 0x129   : > { %v4023_v35 = vpop.f32.mrf.mxu2  ;;  %v4027_v38 = vpop.f32.mrf.mxu0 }
 0x12a   : > { %v4025_v37 = vpop.f32.mrf.mxu3  ;;  %v4029_v39 = vpop.f32.mrf.mxu1 }
 0x12c   : > { %1096 = vmatmul.bf16.gmra.mxu0 %v472_v36 }
 0x12d   : > { %1145 = vmatmul.bf16.gmra.mxu1 %v472_v36 }
 0x12e   : > { %1194 = vmatmul.bf16.gmra.mxu2 %v472_v36 }
 0x12f   : > { %1243 = vmatmul.bf16.gmra.mxu3 %v472_v36 }
 0x131   : > { %v4031_v40 = vpop.f32.mrf.mxu2  ;;  %v4035_v42 = vpop.f32.mrf.mxu0 }
 0x132   : > { %v4033_v41 = vpop.f32.mrf.mxu3  ;;  %v4037_v43 = vpop.f32.mrf.mxu1 }
 0x139   : > { %v4041_v46 = vpop.f32.mrf.mxu2  ;;  %v4045_v49 = vpop.f32.mrf.mxu0 }
 0x13a   : > { %v4043_v48 = vpop.f32.mrf.mxu3  ;;  %v4047_v50 = vpop.f32.mrf.mxu1 }
 0x13c   : > { %1101 = vmatmul.bf16.gmra.mxu0 %v473_v47 }
 0x13d   : > { %1150 = vmatmul.bf16.gmra.mxu1 %v473_v47 }
 0x13e   : > { %1199 = vmatmul.bf16.gmra.mxu2 %v473_v47 }
 0x13f   : > { %1248 = vmatmul.bf16.gmra.mxu3 %v473_v47 }
 0x141   : > { %v4049_v51 = vpop.f32.mrf.mxu2  ;;  %v4053_v53 = vpop.f32.mrf.mxu0 }
 0x142   : > { %v4051_v52 = vpop.f32.mrf.mxu3  ;;  %v4055_v54 = vpop.f32.mrf.mxu1 }
 0x149   : > { %v4059_v57 = vpop.f32.mrf.mxu2  ;;  %v4063_v60 = vpop.f32.mrf.mxu0 }
 0x14a   : > { %v4061_v59 = vpop.f32.mrf.mxu3  ;;  %v4065_v61 = vpop.f32.mrf.mxu1 }
 0x14c   : > { %1106 = vmatmul.bf16.gmra.mxu0 %v474_v58 }
 0x14d   : > { %1155 = vmatmul.bf16.gmra.mxu1 %v474_v58 }
 0x14e   : > { %1204 = vmatmul.bf16.gmra.mxu2 %v474_v58 }
 0x14f   : > { %1253 = vmatmul.bf16.gmra.mxu3 %v474_v58  ;;  %v469_v58 = vld [vmem:[%s3971_s9 + $0x70] sm:$0xff]  ;;  %s3634_s9 = sshra.s32 %s2478_s29, 4  ;;  %s3635_s9 = int_to_ptr.hbm [resolvable:$true] %s3634_s9 }
 0x150   : > { %p3641_p9 = scmp.lt.s32.totalorder %s3635_s9, %s5196_s6 }
 0x151   : > { %v4067_v62 = vpop.f32.mrf.mxu2  ;;  %v4071_v0 = vpop.f32.mrf.mxu0 }
 0x152   : > { %v4069_v63 = vpop.f32.mrf.mxu3  ;;  %v4073_v1 = vpop.f32.mrf.mxu1 }
 0x159   : > { %v4077_v4 = vpop.f32.mrf.mxu2  ;;  %v4081_v7 = vpop.f32.mrf.mxu0 }
 0x15a   : > { %v4079_v6 = vpop.f32.mrf.mxu3  ;;  %v4083_v8 = vpop.f32.mrf.mxu1 }
 0x15c   : > { %1111 = vmatmul.bf16.gmra.mxu0 %v475_v5 }
 0x15d   : > { %1160 = vmatmul.bf16.gmra.mxu1 %v475_v5 }
 0x15e   : > { %1209 = vmatmul.bf16.gmra.mxu2 %v475_v5 }
 0x15f   : > { %1258 = vmatmul.bf16.gmra.mxu3 %v475_v5  ;;  %v478_v5 = vpack.c.bf16 %v470_v2, %v469_v58  ;;  %v1279_v58 = vld [vmem:[%s5195_s5] sm:$0xf] }
 0x161   : > { %v4085_v9 = vpop.f32.mrf.mxu2  ;;  %v4089_v11 = vpop.f32.mrf.mxu0 }
 0x162   : > { %v4087_v10 = vpop.f32.mrf.mxu3  ;;  %v4091_v12 = vpop.f32.mrf.mxu1 }
 0x163   : > { %5224 = vst [vmem:[#allocation24_spill] sm:$0xff] %v4087_v10 }
 0x169   : > { %v4095_v15 = vpop.f32.mrf.mxu2  ;;  %v4099_v18 = vpop.f32.mrf.mxu0 }
 0x16a   : > { %5225 = vst [vmem:[#allocation25_spill] sm:$0xff] %v4095_v15  ;;  %v4097_v17 = vpop.f32.mrf.mxu3  ;;  %v4101_v19 = vpop.f32.mrf.mxu1 }
 0x16b   : > { %5226 = vst [vmem:[#allocation26_spill] sm:$0xff] %v4097_v17 }
 0x16c   : > { %5227 = vst [vmem:[#allocation27_spill] sm:$0xff] %v4099_v18  ;;  %1116 = vmatmul.bf16.gmra.mxu0 %v476_v16 }
 0x16d   : > { %5228 = vst [vmem:[#allocation28_spill] sm:$0xff] %v4101_v19  ;;  %1165 = vmatmul.bf16.gmra.mxu1 %v476_v16 }
 0x16e   : > { %1214 = vmatmul.bf16.gmra.mxu2 %v476_v16 }
 0x16f   : > { %1263 = vmatmul.bf16.gmra.mxu3 %v476_v16 }
 0x171   : > { %v4103_v20 = vpop.f32.mrf.mxu2  ;;  %v4107_v22 = vpop.f32.mrf.mxu0 }
 0x172   : > { %5229 = vst [vmem:[#allocation29_spill] sm:$0xff] %v4103_v20  ;;  %v4105_v21 = vpop.f32.mrf.mxu3  ;;  %v4109_v23 = vpop.f32.mrf.mxu1 }
 0x173   : > { %5230 = vst [vmem:[#allocation30_spill] sm:$0xff] %v4105_v21 }
 0x174   : > { %5231 = vst [vmem:[#allocation31_spill] sm:$0xff] %v4107_v22 }
 0x175   : > { %5232 = vst [vmem:[#allocation32_spill] sm:$0xff] %v4109_v23 }
 0x179   : > { %v4113_v26 = vpop.f32.mrf.mxu2  ;;  %v4117_v36 = vpop.f32.mrf.mxu0 }
 0x17a   : > { %5233 = vst [vmem:[#allocation33_spill] sm:$0xff] %v4113_v26  ;;  %v4115_v34 = vpop.f32.mrf.mxu3  ;;  %v4119_v44 = vpop.f32.mrf.mxu1 }
 0x17b   : > { %5234 = vst [vmem:[#allocation34_spill] sm:$0xff] %v4115_v34 }
 0x17c   : > { %5235 = vst [vmem:[#allocation35_spill] sm:$0xff] %v4117_v36  ;;  %1121 = vmatmul.bf16.gmra.mxu0 %v477_v33 }
 0x17d   : > { %5236 = vst [vmem:[#allocation36_spill] sm:$0xff] %v4119_v44  ;;  %1170 = vmatmul.bf16.gmra.mxu1 %v477_v33 }
 0x17e   : > { %1219 = vmatmul.bf16.gmra.mxu2 %v477_v33 }
 0x17f   : > { %1268 = vmatmul.bf16.gmra.mxu3 %v477_v33 }
 0x181   : > { %v4121_v45 = vpop.f32.mrf.mxu2  ;;  %v4125_v55 = vpop.f32.mrf.mxu0 }
 0x182   : > { %5237 = vst [vmem:[#allocation37_spill] sm:$0xff] %v4121_v45  ;;  %v4123_v47 = vpop.f32.mrf.mxu3  ;;  %v4127_v56 = vpop.f32.mrf.mxu1  ;;  %v4162_v45 = vperm.slane %v1279_v58, 2 }
 0x183   : > { %5238 = vst [vmem:[#allocation38_spill] sm:$0xff] %v4123_v47 }
 0x184   : > { %5239 = vst [vmem:[#allocation39_spill] sm:$0xff] %v4125_v55 }
 0x185   : > { %5240 = vst [vmem:[#allocation40_spill] sm:$0xff] %v4127_v56 }
 0x189   : > { %v4131_v3 = vpop.f32.mrf.mxu2  ;;  %v4135_v14 = vpop.f32.mrf.mxu0 }
 0x18a   : > { %5241 = vst [vmem:[#allocation41_spill] sm:$0xff] %v4131_v3  ;;  %v4133_v13 = vpop.f32.mrf.mxu3  ;;  %v4137_v16 = vpop.f32.mrf.mxu1 }
 0x18b   : > { %5242 = vst [vmem:[#allocation42_spill] sm:$0xff] %v4133_v13  ;;  %v4152_v13 = vperm.slane %v1279_v58, 0 }
 0x18c   : > { %5243 = vst [vmem:[#allocation43_spill] sm:$0xff] %v4135_v14  ;;  %1126 = vmatmul.bf16.gmra.mxu0 %v478_v5 }
 0x18d   : > { %5244 = vst [vmem:[#allocation44_spill] sm:$0xff] %v4137_v16  ;;  %1175 = vmatmul.bf16.gmra.mxu1 %v478_v5 }
 0x18e   : > { %1224 = vmatmul.bf16.gmra.mxu2 %v478_v5 }
 0x18f   : > { %1273 = vmatmul.bf16.gmra.mxu3 %v478_v5  ;;  %v4156_v5 = vperm.slane %v1279_v58, 1 }
 0x191   : > { %v4139_v24 = vpop.f32.mrf.mxu2  ;;  %v4143_v33 = vpop.f32.mrf.mxu0 }
 0x192   : > { %5245 = vst [vmem:[#allocation45_spill] sm:$0xff] %v4139_v24  ;;  %v4141_v25 = vpop.f32.mrf.mxu3  ;;  %v4145_v47 = vpop.f32.mrf.mxu1 }
 0x193   : > { %5246 = vst [vmem:[#allocation46_spill] sm:$0xff] %v4141_v25 }
 0x194   : > { %5247 = vst [vmem:[#allocation47_spill] sm:$0xff] %v4143_v33 }
 0x195   : > { %5248 = vst [vmem:[#allocation48_spill] sm:$0xff] %v4145_v47 }
 0x199   : > { %v4150_v2 = vpop.f32.mrf.mxu2  ;;  %v1092_v14 = vpop.f32.mrf.mxu0 }
 0x19a   : > { %5249 = vst [vmem:[#allocation49_spill] sm:$0xff] %v4150_v2  ;;  %v4154_v16 = vpop.f32.mrf.mxu3  ;;  %v1093_v24 = vadd.f32 %v1092_v14, %v4009_v27  ;;  %v1141_v25 = vpop.f32.mrf.mxu1 }
 0x19b   : > { %5250 = vst [vmem:[#allocation50_spill] sm:$0xff] %v4154_v16  ;;  %v1142_v33 = vadd.f32 %v1141_v25, %v4011_v28 }
 0x19c   : > { %v1289_v47 = vadd.f32 %v4152_v13, %v1093_v24 }
 0x19d   : > { %v1290_v3 = vadd.f32 %v4156_v5, %v1142_v33 }
 0x19e   : > { %v2956_v56 = vmul.f32 -1.442695, %v1289_v47 }
 0x19f   : > { %v2972_v55 = vmul.f32 -1.442695, %v1290_v3 }
 0x1a0   : > { %3214 = vpow2.f32 %v2956_v56 }
 0x1a1   : > { %v1190_v2 = vpop.f32.mrf.mxu2  ;;  %3216 = vpow2.f32 %v2972_v55  ;;  %v1094_v44 = vpop.f32.mrf.mxu0  ;;  %v4171_v55 = vperm.slane %v1279_v58, 3 }
 0x1a2   : > { %v1191_v16 = vadd.f32 %v1190_v2, %v4013_v29  ;;  %v1095_v36 = vadd.f32 %v1094_v44, %v4017_v31  ;;  %v1143_v27 = vpop.f32.mrf.mxu1  ;;  %v1239_v28 = vpop.f32.mrf.mxu3 }
 0x1a3   : > { %v1144_v24 = vadd.f32 %v1143_v27, %v4019_v32  ;;  %v1240_v56 = vadd.f32 %v1239_v28, %v4015_v30 }
 0x1a4   : > { %v1291_v14 = vadd.f32 %v4162_v45, %v1191_v16  ;;  %v1293_v25 = vadd.f32 %v4152_v13, %v1095_v36 }
 0x1a5   : > { %v1294_v3 = vadd.f32 %v4156_v5, %v1144_v24  ;;  %v1292_v32 = vadd.f32 %v4171_v55, %v1240_v56 }
 0x1a6   : > { %v2988_v47 = vmul.f32 -1.442695, %v1291_v14  ;;  %v3215_v33 = vpop.eup %3214  ;;  %v2957_v29 = vmul.f32 -1.442695, %v1293_v25 }
 0x1a7   : > { %v3217_v2 = vpop.eup %3216  ;;  %v1401_v34 = vadd.f32 1.0, %v3215_v33  ;;  %v2973_v31 = vmul.f32 -1.442695, %v1294_v3 }
 0x1a8   : > { %3218 = vpow2.f32 %v2988_v47  ;;  %v1705_v44 = vadd.f32 1.0, %v3217_v2 }
 0x1a9   : > { %3220 = vpow2.f32 %v2957_v29  ;;  %v1192_v16 = vpop.f32.mrf.mxu2  ;;  %v1097_v27 = vpop.f32.mrf.mxu0  ;;  %v1426_v30 = vand.u32 2147483647, %v1401_v34  ;;  %vm1422_vm0 = vweird.f32 %v1401_v34  ;;  %v1428_v56 = vand.u32 2147483648, %v1401_v34 }
 0x1aa   : > { %3222 = vrcp.f32 %v1401_v34  ;;  %v1193_v36 = vadd.f32 %v1192_v16, %v4023_v35  ;;  %v1241_v25 = vpop.f32.mrf.mxu3  ;;  %v1098_v47 = vadd.f32 %v1097_v27, %v4027_v38  ;;  %v1146_v3 = vpop.f32.mrf.mxu1  ;;  %vm1726_vm1 = vweird.f32 %v1705_v44 }
 0x1ab   : > { %3224 = vrcp.f32 %v1705_v44  ;;  %v1732_v16 = vand.u32 2147483648, %v1705_v44  ;;  %vm4182_vm2 = vcmp.eq.f32.partialorder %v1426_v30, 8.507059e+37  ;;  %v1242_v38 = vadd.f32 %v1241_v25, %v4025_v37 }
 0x1ac   : > { %3226 = vpow2.f32 %v2973_v31  ;;  %v1295_v58 = vadd.f32 %v4162_v45, %v1193_v36  ;;  %v1730_v36 = vand.u32 2147483647, %v1705_v44  ;;  %v1147_v27 = vadd.f32 %v1146_v3, %v4029_v39 }
 0x1ad   : > { %3228 = vtanh.f32 %v1292_v32  ;;  %v1429_v20 = vor.u32 1.1754944e-38, %v1428_v56  ;;  %v1733_v39 = vor.u32 1.1754944e-38, %v1732_v16  ;;  %v1296_v3 = vadd.f32 %v4171_v55, %v1242_v38 }
 0x1ae   : > { %v3219_v14 = vpop.eup %3218  ;;  %v2989_v35 = vmul.f32 -1.442695, %v1295_v58  ;;  %vm4195_vm5 = vcmp.eq.f32.partialorder %v1730_v36, 8.507059e+37 }
 0x1af   : > { %v3221_v28 = vpop.eup %3220  ;;  %v4176_v24 = vadd.f32 1.0, %v3219_v14 }
 0x1b0   : > { %v3223_v33 = vpop.eup %3222  ;;  %v4179_v29 = vadd.f32 1.0, %v3221_v28  ;;  %v1297_v28 = vadd.f32 %v4152_v13, %v1098_v47 }
 0x1b1   : > { %v3225_v2 = vpop.eup %3224  ;;  %v1418_v31 = vmul.f32 %v3223_v33, %v1401_v34  ;;  %3230 = vrcp.f32 %v4176_v24  ;;  %v2034_v22 = vand.u32 2147483647, %v4176_v24  ;;  %v2036_v19 = vand.u32 2147483648, %v4176_v24 }
 0x1b2   : > { %v3227_v14 = vpop.eup %3226  ;;  %v1722_v21 = vmul.f32 %v3225_v2, %v1705_v44  ;;  %3232 = vrcp.f32 %v4179_v29  ;;  %vm1423_vm3 = vweird.f32 %v3223_v33  ;;  %vm1727_vm4 = vweird.f32 %v3225_v2  ;;  %v2297_v44 = vld [vmem:[%s3963_s14] sm:$0xff] }
 0x1b3   : > { %v1419_v26 = vsub.f32 1.0, %v1418_v31  ;;  %v4189_v58 = vadd.f32 1.0, %v3227_v14  ;;  %3234 = vpow2.f32 %v2989_v35  ;;  %v3229_v30 = vpop.eup %3228  ;;  %v2958_v56 = vmul.f32 -1.442695, %v1297_v28  ;;  %vm1424_vm8 = vmor %vm1422_vm0, %vm1423_vm3 }
 0x1b4   : > { %v1723_v23 = vsub.f32 1.0, %v1722_v21  ;;  %v1298_v35 = vadd.f32 %v4156_v5, %v1147_v27  ;;  %vm2030_vm6 = vweird.f32 %v4176_v24  ;;  %vm4203_vm7 = vcmp.eq.f32.partialorder %v2034_v22, 8.507059e+37  ;;  %vm1728_vm9 = vmor %vm1726_vm1, %vm1727_vm4 }
 0x1b5   : > { %v1420_v18 = vmul.f32 %v3223_v33, %v1419_v26  ;;  %3236 = vrcp.f32 %v4189_v58  ;;  %v1747_v14 = vand.u32 2147483648, %v4189_v58  ;;  %vm1437_vm10 = vweird.f32 %v4179_v29 }
 0x1b6   : > { %v1724_v37 = vmul.f32 %v3225_v2, %v1723_v23  ;;  %3238 = vpow2.f32 %v2958_v56  ;;  %vm1741_vm11 = vweird.f32 %v4189_v58 }
 0x1b7   : > { %v3231_v47 = vpop.eup %3230  ;;  %v1421_v21 = vadd.f32 %v3223_v33, %v1420_v18  ;;  %v2037_v18 = vor.u32 1.1754944e-38, %v2036_v19  ;;  %v1748_v25 = vor.u32 1.1754944e-38, %v1747_v14 }
 0x1b8   : > { %v2026_v31 = vmul.f32 %v3231_v47, %v4176_v24  ;;  %v1725_v23 = vadd.f32 %v3225_v2, %v1724_v37  ;;  %v4208_v16 = vpop.eup %3232  ;;  %vm2031_vm12 = vweird.f32 %v3231_v47 }
 0x1b9   : > { %v1425_v36 = vsel %vm1424_vm8, %v3223_v33, %v1421_v21  ;;  %v3235_v38 = vpop.eup %3234  ;;  %v1433_v34 = vmul.f32 %v4208_v16, %v4179_v29  ;;  %v1441_v21 = vand.u32 2147483647, %v4179_v29  ;;  %vm1438_vm13 = vweird.f32 %v4208_v16  ;;  %vm2032_vm14 = vmor %vm2030_vm6, %vm2031_vm12 }
 0x1ba   : > { %v2027_v27 = vsub.f32 1.0, %v2026_v31  ;;  %v1430_v22 = vsel %vm4182_vm2, %v1429_v20, %v1425_v36  ;;  %v1729_v28 = vsel %vm1728_vm9, %v3225_v2, %v1725_v23  ;;  %v4223_v33 = vadd.f32 1.0, %v3235_v38  ;;  %v1195_v2 = vpop.f32.mrf.mxu2  ;;  %vm4252_vm0 = vmor %vm1437_vm10, %vm1438_vm13 }
 0x1bb   : > { %v4217_v37 = vpop.eup %3236  ;;  %v1734_v19 = vsel %vm4195_vm5, %v1733_v39, %v1729_v28  ;;  %v1443_v20 = vand.u32 2147483648, %v4179_v29  ;;  %v1434_v56 = vsub.f32 1.0, %v1433_v34  ;;  %v2281_v23 = vmul.f32 %v3229_v30, %v1430_v22 }
 0x1bc   : > { %v2028_v32 = vmul.f32 %v3231_v47, %v2027_v27  ;;  %v1737_v31 = vmul.f32 %v4217_v37, %v4189_v58  ;;  %3240 = vrcp.f32 %v4223_v33  ;;  %v1745_v39 = vand.u32 2147483647, %v4189_v58  ;;  %v3239_v17 = vpop.eup %3238  ;;  %v2345_v27 = vld [vmem:[%s3978_s4] sm:$0xff]  ;;  %v1148_v58 = vpop.f32.mrf.mxu1 }
 0x1bd   : > { %v2313_v38 = vmul.f32 %v2297_v44, %v1734_v19  ;;  %vm1742_vm15 = vweird.f32 %v4217_v37  ;;  %v1435_v34 = vmul.f32 %v4208_v16, %v1434_v56  ;;  %v2974_v30 = vmul.f32 -1.442695, %v1298_v35 }
 0x1be   : > { %v2029_v36 = vadd.f32 %v3231_v47, %v2028_v32  ;;  %v1738_v28 = vsub.f32 1.0, %v1737_v31  ;;  %v1196_v14 = vadd.f32 %v1195_v2, %v4031_v40  ;;  %v2049_v19 = vand.u32 2147483647, %v4223_v33  ;;  %v1244_v32 = vpop.f32.mrf.mxu3  ;;  %vm4265_vm2 = vmor %vm1741_vm11, %vm1742_vm15 }
 0x1bf   : > { %v4240_v44 = vadd.f32 1.0, %v3239_v17  ;;  %v1436_v31 = vadd.f32 %v4208_v16, %v1435_v34  ;;  %3242 = vpow2.f32 %v2974_v30  ;;  %v2329_v56 = vadd.f32 %v2313_v38, %v2281_v23 }
 0x1c0   : > { %v2033_v22 = vsel %vm2032_vm14, %v3231_v47, %v2029_v36  ;;  %v1739_v15 = vmul.f32 %v4217_v37, %v1738_v28  ;;  %v1299_v10 = vadd.f32 %v4162_v45, %v1196_v14  ;;  %vm4256_vm1 = vcmp.eq.f32.partialorder %v1441_v21, 8.507059e+37 }
 0x1c1   : > { %v2038_v24 = vsel %vm4203_vm7, %v2037_v18, %v2033_v22  ;;  %3244 = vrcp.f32 %v4240_v44  ;;  %v1440_v21 = vsel %vm4252_vm0, %v4208_v16, %v1436_v31  ;;  %v1444_v36 = vor.u32 1.1754944e-38, %v1443_v20 }
 0x1c2   : > { %v2361_v35 = vmul.f32 %v2345_v27, %v2038_v24  ;;  %v1740_v40 = vadd.f32 %v4217_v37, %v1739_v15  ;;  %v3241_v47 = vpop.eup %3240  ;;  %3246 = vtanh.f32 %v1296_v3  ;;  %v2990_v18 = vmul.f32 -1.442695, %v1299_v10  ;;  %v1099_v3 = vpop.f32.mrf.mxu0  ;;  %v2298_v27 = vld [vmem:[%s3963_s14 + $0x8] sm:$0xff] }
 0x1c3   : > { %v1245_v15 = vadd.f32 %v1244_v32, %v4033_v41  ;;  %v2041_v23 = vmul.f32 %v3241_v47, %v4223_v33  ;;  %v2051_v41 = vand.u32 2147483648, %v4223_v33  ;;  %vm1746_vm3 = vcmp.eq.f32.partialorder %v1745_v39, 8.507059e+37  ;;  %v1197_v38 = vpop.f32.mrf.mxu2 }
 0x1c4   : > { %v2377_v2 = vadd.f32 %v2361_v35, %v2329_v56  ;;  %v1744_v10 = vsel %vm4265_vm2, %v4217_v37, %v1740_v40  ;;  %3248 = vpow2.f32 %v2990_v18  ;;  %vm2045_vm4 = vweird.f32 %v4223_v33 }
 0x1c5   : > { %v2042_v28 = vsub.f32 1.0, %v2041_v23  ;;  %vm2046_vm5 = vweird.f32 %v3241_v47  ;;  %vm4282_vm6 = vcmp.eq.f32.partialorder %v2049_v19, 8.507059e+37  ;;  %v3243_v20 = vpop.eup %3242  ;;  %v1445_v37 = vsel %vm4256_vm1, %v1444_v36, %v1440_v21 }
 0x1c6   : > { %2393 = vst [vmem:[%s4278_s11] sm:$0xff] %v2377_v2  ;;  %v1749_v39 = vsel %vm1746_vm3, %v1748_v25, %v1744_v10  ;;  %v1300_v34 = vadd.f32 %v4171_v55, %v1245_v15  ;;  %v1100_v30 = vadd.f32 %v1099_v3, %v4035_v42  ;;  %v4293_v32 = vadd.f32 1.0, %v3243_v20  ;;  %vm2047_vm7 = vmor %vm2045_vm4, %vm2046_vm5  ;;  %v1246_v29 = vpop.f32.mrf.mxu3 }
 0x1c7   : > { %v4291_v14 = vpop.eup %3244  ;;  %v2043_v22 = vmul.f32 %v3241_v47, %v2042_v28  ;;  %v1149_v19 = vadd.f32 %v1148_v58, %v4037_v43  ;;  %v1198_v24 = vadd.f32 %v1197_v38, %v4041_v46  ;;  %3250 = vtanh.f32 %v2377_v2  ;;  %v2346_v43 = vld [vmem:[%s3978_s4 + $0x8] sm:$0xff] }
 0x1c8   : > { %v3247_v31 = vpop.eup %3246  ;;  %v2052_v56 = vor.u32 1.1754944e-38, %v2051_v41  ;;  %v1448_v25 = vmul.f32 %v4291_v14, %v4240_v44  ;;  %v1456_v35 = vand.u32 2147483647, %v4240_v44  ;;  %v2314_v17 = vmul.f32 %v2298_v27, %v1749_v39 }
 0x1c9   : > { %v2044_v40 = vadd.f32 %v3241_v47, %v2043_v22  ;;  %v2282_v42 = vmul.f32 %v3247_v31, %v1445_v37  ;;  %3252 = vrcp.f32 %v4293_v32  ;;  %v1458_v18 = vand.u32 2147483648, %v4240_v44  ;;  %v1151_v31 = vpop.f32.mrf.mxu1 }
 0x1ca   : > { %v3249_v26 = vpop.eup %3248  ;;  %v1449_v46 = vsub.f32 1.0, %v1448_v25  ;;  %v1301_v15 = vadd.f32 %v4152_v13, %v1100_v30  ;;  %v1302_v2 = vadd.f32 %v4156_v5, %v1149_v19  ;;  %3254 = vtanh.f32 %v1300_v34  ;;  %v1102_v37 = vpop.f32.mrf.mxu0 }
 0x1cb   : > { %v2048_v23 = vsel %vm2047_vm7, %v3241_v47, %v2044_v40  ;;  %v4308_v21 = vadd.f32 1.0, %v3249_v26  ;;  %v1303_v36 = vadd.f32 %v4162_v45, %v1198_v24  ;;  %v1762_v33 = vand.u32 2147483648, %v4293_v32 }
 0x1cc   : > { %v2053_v3 = vsel %vm4282_vm6, %v2052_v56, %v2048_v23  ;;  %v1450_v41 = vmul.f32 %v4291_v14, %v1449_v46  ;;  %v2959_v10 = vmul.f32 -1.442695, %v1301_v15  ;;  %v2330_v58 = vadd.f32 %v2314_v17, %v2282_v42 }
 0x1cd   : > { %v2362_v38 = vmul.f32 %v2346_v43, %v2053_v3  ;;  %3256 = vrcp.f32 %v4308_v21  ;;  %vm1452_vm8 = vweird.f32 %v4240_v44  ;;  %v4317_v47 = vpop.eup %3250  ;;  %vm4319_vm9 = vcmp.eq.f32.partialorder %v1456_v35, 8.507059e+37  ;;  %v1200_v44 = vpop.f32.mrf.mxu2 }
 0x1ce   : > { %v1760_v16 = vand.u32 2147483647, %v4293_v32  ;;  %3258 = vpow2.f32 %v2959_v10  ;;  %v2975_v20 = vmul.f32 -1.442695, %v1302_v2  ;;  %v1451_v34 = vadd.f32 %v4291_v14, %v1450_v41  ;;  %v1249_v23 = vpop.f32.mrf.mxu3 }
 0x1cf   : > { %v3253_v39 = vpop.eup %3252  ;;  %v2378_v27 = vadd.f32 %v2362_v38, %v2330_v58  ;;  %vm1453_vm10 = vweird.f32 %v4291_v14  ;;  %v2991_v30 = vmul.f32 -1.442695, %v1303_v36  ;;  %vm1756_vm11 = vweird.f32 %v4293_v32 }
 0x1d0   : > { %v1752_v22 = vmul.f32 %v3253_v39, %v4293_v32  ;;  %v1763_v19 = vor.u32 1.1754944e-38, %v1762_v33  ;;  %v1459_v24 = vor.u32 1.1754944e-38, %v1458_v18  ;;  %v3255_v56 = vpop.eup %3254  ;;  %v2064_v25 = vand.u32 2147483647, %v4308_v21  ;;  %vm4337_vm13 = vmor %vm1452_vm8, %vm1453_vm10 }
 0x1d1   : > { %2394 = vst [vmem:[%s4278_s11 + $0x8] sm:$0xff] %v2378_v27  ;;  %3260 = vtanh.f32 %v2378_v27  ;;  %v1247_v35 = vadd.f32 %v1246_v29, %v4043_v48  ;;  %v1103_v40 = vadd.f32 %v1102_v37, %v4045_v49  ;;  %vm2060_vm12 = vweird.f32 %v4308_v21 }
 0x1d2   : > { %v1753_v42 = vsub.f32 1.0, %v1752_v22  ;;  %vm4341_vm14 = vcmp.eq.f32.partialorder %v1760_v16, 8.507059e+37  ;;  %3262 = vpow2.f32 %v2975_v20  ;;  %v1455_v48 = vsel %vm4337_vm13, %v4291_v14, %v1451_v34  ;;  %v2299_v16 = vld [vmem:[%s3963_s14 + $0x10] sm:$0xff] }
 0x1d3   : > { %v3257_v43 = vpop.eup %3256  ;;  %3264 = vpow2.f32 %v2991_v30  ;;  %v1305_v49 = vadd.f32 %v4152_v13, %v1103_v40  ;;  %v1152_v46 = vadd.f32 %v1151_v31, %v4047_v50  ;;  %vm1757_vm15 = vweird.f32 %v3253_v39 }
 0x1d4   : > { %v3259_v18 = vpop.eup %3258  ;;  %v1754_v15 = vmul.f32 %v3253_v39, %v1753_v42  ;;  %v2056_v2 = vmul.f32 %v3257_v43, %v4308_v21  ;;  %v2066_v29 = vand.u32 2147483648, %v4308_v21  ;;  %vm4353_vm0 = vcmp.eq.f32.partialorder %v2064_v25, 8.507059e+37  ;;  %vm1758_vm1 = vmor %vm1756_vm11, %vm1757_vm15  ;;  %v1104_v25 = vpop.f32.mrf.mxu0 }
 0x1d5   : > { %v4357_v14 = vadd.f32 1.0, %v3259_v18  ;;  %v1304_v3 = vadd.f32 %v4171_v55, %v1247_v35  ;;  %v2960_v50 = vmul.f32 -1.442695, %v1305_v49  ;;  %v1460_v41 = vsel %vm4319_vm9, %v1459_v24, %v1455_v48 }
 0x1d6   : > { %v2057_v33 = vsub.f32 1.0, %v2056_v2  ;;  %v1755_v10 = vadd.f32 %v3253_v39, %v1754_v15  ;;  %v1201_v58 = vadd.f32 %v1200_v44, %v4049_v51  ;;  %vm2061_vm2 = vweird.f32 %v3257_v43 }
 0x1d7   : > { %v3261_v38 = vpop.eup %3260  ;;  %3266 = vrcp.f32 %v4357_v14  ;;  %v1306_v20 = vadd.f32 %v4156_v5, %v1152_v46  ;;  %v1250_v37 = vadd.f32 %v1249_v23, %v4051_v52  ;;  %v2283_v22 = vmul.f32 %v3255_v56, %v1460_v41  ;;  %vm2062_vm3 = vmor %vm2060_vm12, %vm2061_vm2  ;;  %v2347_v56 = vld [vmem:[%s3978_s4 + $0x10] sm:$0xff] }
 0x1d8   : > { %v3263_v27 = vpop.eup %3262  ;;  %v3085_v28 = vpack.c.bf16 %v3261_v38, %v4317_v47  ;;  %v2058_v34 = vmul.f32 %v3257_v43, %v2057_v33  ;;  %v1759_v30 = vsel %vm1758_vm1, %v3253_v39, %v1755_v10  ;;  %3268 = vpow2.f32 %v2960_v50 }
 0x1d9   : > { %v3265_v51 = vpop.eup %3264  ;;  %v1764_v32 = vsel %vm4341_vm14, %v1763_v19, %v1759_v30  ;;  %v4372_v24 = vadd.f32 1.0, %v3263_v27  ;;  %3270 = vtanh.f32 %v1304_v3  ;;  %v1471_v39 = vand.u32 2147483647, %v4357_v14 }
 0x1da   : > { %3086 = vst [vmem:[%s4376_s1] sm:$0xff] %v3085_v28   ;;  %v2059_v52 = vadd.f32 %v3257_v43, %v2058_v34  ;;  %v2315_v31 = vmul.f32 %v2299_v16, %v1764_v32  ;;  %v4379_v47 = vadd.f32 1.0, %v3265_v51  ;;  %v2067_v19 = vor.u32 1.1754944e-38, %v2066_v29  ;;  %v1153_v28 = vpop.f32.mrf.mxu1  ;;  %v1202_v34 = vpop.f32.mrf.mxu2 }
 0x1db   : > { %3272 = vrcp.f32 %v4372_v24  ;;  %v2976_v35 = vmul.f32 -1.442695, %v1306_v20  ;;  %v1307_v40 = vadd.f32 %v4162_v45, %v1201_v58  ;;  %v1473_v17 = vand.u32 2147483648, %v4357_v14 }
 0x1dc   : > { %v2063_v42 = vsel %vm2062_vm3, %v3257_v43, %v2059_v52  ;;  %3274 = vrcp.f32 %v4379_v47  ;;  %v1308_v26 = vadd.f32 %v4171_v55, %v1250_v37  ;;  %v1777_v21 = vand.u32 2147483648, %v4372_v24 }
 0x1dd   : > { %v3267_v48 = vpop.eup %3266  ;;  %v2068_v49 = vsel %vm4353_vm0, %v2067_v19, %v2063_v42  ;;  %vm1467_vm4 = vweird.f32 %v4357_v14  ;;  %v1105_v46 = vadd.f32 %v1104_v25, %v4053_v53  ;;  %v2331_v18 = vadd.f32 %v2315_v31, %v2283_v22 }
 0x1de   : > { %v3269_v44 = vpop.eup %3268  ;;  %v2363_v15 = vmul.f32 %v2347_v56, %v2068_v49  ;;  %v1463_v43 = vmul.f32 %v3267_v48, %v4357_v14  ;;  %vm4397_vm5 = vcmp.eq.f32.partialorder %v1471_v39, 8.507059e+37  ;;  %v1775_v29 = vand.u32 2147483647, %v4372_v24 }
 0x1df   : > { %v3271_v23 = vpop.eup %3270  ;;  %v2079_v36 = vand.u32 2147483647, %v4379_v47  ;;  %v2081_v3 = vand.u32 2147483648, %v4379_v47  ;;  %v4404_v50 = vadd.f32 1.0, %v3269_v44  ;;  %3276 = vpow2.f32 %v2976_v35 }
 0x1e0   : > { %v2379_v53 = vadd.f32 %v2363_v15, %v2331_v18  ;;  %v1464_v33 = vsub.f32 1.0, %v1463_v43  ;;  %v1474_v41 = vor.u32 1.1754944e-38, %v1473_v17  ;;  %v2992_v10 = vmul.f32 -1.442695, %v1307_v40  ;;  %v2300_v18 = vld [vmem:[%s3963_s14 + $0x18] sm:$0xff] }
 0x1e1   : > { %v3273_v58 = vpop.eup %3272  ;;  %vm1771_vm6 = vweird.f32 %v4372_v24  ;;  %v1778_v38 = vor.u32 1.1754944e-38, %v1777_v21  ;;  %vm2075_vm7 = vweird.f32 %v4379_v47  ;;  %3278 = vrcp.f32 %v4404_v50 }
 0x1e2   : > { %v3275_v16 = vpop.eup %3274  ;;  %2395 = vst [vmem:[%s4278_s11 + $0x10] sm:$0xff] %v2379_v53  ;;  %v1767_v20 = vmul.f32 %v3273_v58, %v4372_v24  ;;  %v1465_v37 = vmul.f32 %v3267_v48, %v1464_v33  ;;  %vm1468_vm8 = vweird.f32 %v3267_v48  ;;  %vm4411_vm9 = vcmp.eq.f32.partialorder %v1775_v29, 8.507059e+37  ;;  %v1251_v24 = vpop.f32.mrf.mxu3 }
 0x1e3   : > { %v2071_v30 = vmul.f32 %v3275_v16, %v4379_v47  ;;  %vm4416_vm10 = vcmp.eq.f32.partialorder %v2079_v36, 8.507059e+37  ;;  %v2082_v32 = vor.u32 1.1754944e-38, %v2081_v3  ;;  %3280 = vpow2.f32 %v2992_v10  ;;  %vm1469_vm11 = vmor %vm1467_vm4, %vm1468_vm8  ;;  %v2348_v3 = vld [vmem:[%s3978_s4 + $0x18] sm:$0xff] }
 0x1e4   : > { %v1768_v22 = vsub.f32 1.0, %v1767_v20  ;;  %v1466_v52 = vadd.f32 %v3267_v48, %v1465_v37  ;;  %3282 = vtanh.f32 %v1308_v26  ;;  %v1309_v31 = vadd.f32 %v4152_v13, %v1105_v46 }
 0x1e5   : > { %v3277_v39 = vpop.eup %3276  ;;  %v2072_v25 = vsub.f32 1.0, %v2071_v30  ;;  %v1486_v19 = vand.u32 2147483647, %v4404_v50  ;;  %v1154_v56 = vadd.f32 %v1153_v28, %v4055_v54  ;;  %v1203_v35 = vadd.f32 %v1202_v34, %v4059_v57 }
 0x1e6   : > { %v1769_v40 = vmul.f32 %v3273_v58, %v1768_v22  ;;  %vm1772_vm12 = vweird.f32 %v3273_v58  ;;  %v1470_v42 = vsel %vm1469_vm11, %v3267_v48, %v1466_v52  ;;  %v4426_v17 = vadd.f32 1.0, %v3277_v39  ;;  %v1107_v39 = vpop.f32.mrf.mxu0 }
 0x1e7   : > { %v4428_v26 = vpop.eup %3278  ;;  %v2073_v49 = vmul.f32 %v3275_v16, %v2072_v25  ;;  %vm2076_vm13 = vweird.f32 %v3275_v16  ;;  %v1475_v14 = vsel %vm4397_vm5, %v1474_v41, %v1470_v42  ;;  %v2961_v21 = vmul.f32 -1.442695, %v1309_v31  ;;  %vm1773_vm15 = vmor %vm1771_vm6, %vm1772_vm12 }
 0x1e8   : > { %v1770_v46 = vadd.f32 %v3273_v58, %v1769_v40  ;;  %v1478_v54 = vmul.f32 %v4428_v26, %v4404_v50  ;;  %3284 = vrcp.f32 %v4426_v17  ;;  %vm1482_vm14 = vweird.f32 %v4404_v50  ;;  %vm2077_vm0 = vmor %vm2075_vm7, %vm2076_vm13 }
 0x1e9   : > { %v1488_v57 = vand.u32 2147483648, %v4404_v50  ;;  %v3281_v48 = vpop.eup %3280  ;;  %3286 = vtanh.f32 %v2379_v53  ;;  %v2074_v44 = vadd.f32 %v3275_v16, %v2073_v49  ;;  %v1310_v15 = vadd.f32 %v4156_v5, %v1154_v56  ;;  %v1156_v56 = vpop.f32.mrf.mxu1 }
 0x1ea   : > { %v1311_v43 = vadd.f32 %v4162_v45, %v1203_v35  ;;  %v4443_v2 = vpop.eup %3282  ;;  %v1774_v29 = vsel %vm1773_vm15, %v3273_v58, %v1770_v46  ;;  %v2284_v36 = vmul.f32 %v3271_v23, %v1475_v14  ;;  %v1479_v53 = vsub.f32 1.0, %v1478_v54 }
 0x1eb   : > { %v4449_v33 = vadd.f32 1.0, %v3281_v48  ;;  %v1779_v41 = vsel %vm4411_vm9, %v1778_v38, %v1774_v29  ;;  %v2078_v10 = vsel %vm2077_vm0, %v3275_v16, %v2074_v44  ;;  %v1792_v20 = vand.u32 2147483648, %v4426_v17  ;;  %v1205_v44 = vpop.f32.mrf.mxu2 }
 0x1ec   : > { %3288 = vpow2.f32 %v2961_v21  ;;  %v2083_v37 = vsel %vm4416_vm10, %v2082_v32, %v2078_v10  ;;  %v2316_v28 = vmul.f32 %v2300_v18, %v1779_v41  ;;  %vm4457_vm1 = vcmp.eq.f32.partialorder %v1486_v19, 8.507059e+37 }
 0x1ed   : > { %3290 = vrcp.f32 %v4449_v33  ;;  %v2364_v23 = vmul.f32 %v2348_v3, %v2083_v37  ;;  %v1480_v58 = vmul.f32 %v4428_v26, %v1479_v53  ;;  %v1489_v34 = vor.u32 1.1754944e-38, %v1488_v57  ;;  %v2301_v3 = vld [vmem:[%s3963_s14 + $0x20] sm:$0xff] }
 0x1ee   : > { %v1252_v38 = vadd.f32 %v1251_v24, %v4061_v59  ;;  %v3285_v16 = vpop.eup %3284  ;;  %v2332_v27 = vadd.f32 %v2316_v28, %v2284_v36  ;;  %vm1483_vm2 = vweird.f32 %v4428_v26  ;;  %v2977_v30 = vmul.f32 -1.442695, %v1310_v15 }
 0x1ef   : > { %v2993_v51 = vmul.f32 -1.442695, %v1311_v43  ;;  %v4464_v32 = vpop.eup %3286  ;;  %v1782_v22 = vmul.f32 %v3285_v16, %v4426_v17  ;;  %vm1786_vm3 = vweird.f32 %v4426_v17  ;;  %v1793_v52 = vor.u32 1.1754944e-38, %v1792_v20  ;;  %vm1484_vm5 = vmor %vm1482_vm14, %vm1483_vm2 }
 0x1f0   : > { %v1790_v31 = vand.u32 2147483647, %v4426_v17  ;;  %v2380_v25 = vadd.f32 %v2364_v23, %v2332_v27  ;;  %v2094_v59 = vand.u32 2147483647, %v4449_v33  ;;  %v1481_v19 = vadd.f32 %v4428_v26, %v1480_v58  ;;  %v2349_v27 = vld [vmem:[%s3978_s4 + $0x20] sm:$0xff] }
 0x1f1   : > { %3292 = vpow2.f32 %v2977_v30  ;;  %v1783_v40 = vsub.f32 1.0, %v1782_v22  ;;  %vm1787_vm4 = vweird.f32 %v3285_v16  ;;  %v2096_v42 = vand.u32 2147483648, %v4449_v33 }
 0x1f2   : > { %v3289_v35 = vpop.eup %3288  ;;  %3294 = vpow2.f32 %v2993_v51  ;;  %2396 = vst [vmem:[%s4278_s11 + $0x18] sm:$0xff] %v2380_v25  ;;  %v1485_v14 = vsel %vm1484_vm5, %v4428_v26, %v1481_v19  ;;  %v1108_v46 = vadd.f32 %v1107_v39, %v4063_v60  ;;  %v1157_v50 = vadd.f32 %v1156_v56, %v4065_v61  ;;  %vm1788_vm9 = vmor %vm1786_vm3, %vm1787_vm4 }
 0x1f3   : > { %v3291_v49 = vpop.eup %3290  ;;  %3296 = vtanh.f32 %v2380_v25  ;;  %v4478_v21 = vadd.f32 1.0, %v3289_v35  ;;  %v1784_v54 = vmul.f32 %v3285_v16, %v1783_v40  ;;  %v1490_v48 = vsel %vm4457_vm1, %v1489_v34, %v1485_v14 }
 0x1f4   : > { %v2086_v57 = vmul.f32 %v3291_v49, %v4449_v33  ;;  %vm2090_vm6 = vweird.f32 %v4449_v33  ;;  %vm4486_vm7 = vcmp.eq.f32.partialorder %v2094_v59, 8.507059e+37  ;;  %vm4490_vm8 = vcmp.eq.f32.partialorder %v1790_v31, 8.507059e+37 }
 0x1f5   : > { %3298 = vrcp.f32 %v4478_v21  ;;  %v2097_v15 = vor.u32 1.1754944e-38, %v2096_v42  ;;  %v1785_v43 = vadd.f32 %v3285_v16, %v1784_v54  ;;  %v1312_v29 = vadd.f32 %v4171_v55, %v1252_v38 }
 0x1f6   : > { %v2087_v60 = vsub.f32 1.0, %v2086_v57  ;;  %vm2091_vm10 = vweird.f32 %v3291_v49  ;;  %v2285_v61 = vmul.f32 %v4443_v2, %v1490_v48  ;;  %v1313_v53 = vadd.f32 %v4152_v13, %v1108_v46  ;;  %v1109_v48 = vpop.f32.mrf.mxu0 }
 0x1f7   : > { %v3293_v36 = vpop.eup %3292  ;;  %v1206_v24 = vadd.f32 %v1205_v44, %v4067_v62  ;;  %v1789_v20 = vsel %vm1788_vm9, %v3285_v16, %v1785_v43  ;;  %v1314_v28 = vadd.f32 %v4156_v5, %v1157_v50  ;;  %v1501_v2 = vand.u32 2147483647, %v4478_v21  ;;  %vm2092_vm11 = vmor %vm2090_vm6, %vm2091_vm10  ;;  %v1158_v50 = vpop.f32.mrf.mxu1 }
 0x1f8   : > { %v3295_v41 = vpop.eup %3294  ;;  %v2088_v10 = vmul.f32 %v3291_v49, %v2087_v60  ;;  %v4503_v37 = vadd.f32 1.0, %v3293_v36  ;;  %v1794_v17 = vsel %vm4490_vm8, %v1793_v52, %v1789_v20  ;;  %v1503_v58 = vand.u32 2147483648, %v4478_v21 }
 0x1f9   : > { %v3297_v47 = vpop.eup %3296  ;;  %v4508_v23 = vadd.f32 1.0, %v3295_v41  ;;  %v2317_v38 = vmul.f32 %v2301_v3, %v1794_v17  ;;  %vm1497_vm12 = vweird.f32 %v4478_v21  ;;  %v2962_v30 = vmul.f32 -1.442695, %v1313_v53  ;;  %v1207_v17 = vpop.f32.mrf.mxu2 }
 0x1fa   : > { %v3090_v62 = vpack.c.bf16 %v3297_v47, %v4464_v32  ;;  %v2089_v34 = vadd.f32 %v3291_v49, %v2088_v10  ;;  %3300 = vrcp.f32 %v4503_v37  ;;  %v1315_v51 = vadd.f32 %v4162_v45, %v1206_v24 }
 0x1fb   : > { %v3299_v16 = vpop.eup %3298  ;;  %3302 = vrcp.f32 %v4508_v23  ;;  %v2978_v52 = vmul.f32 -1.442695, %v1314_v28  ;;  %v1807_v33 = vand.u32 2147483648, %v4503_v37  ;;  %vm4526_vm13 = vcmp.eq.f32.partialorder %v1501_v2, 8.507059e+37 }
 0x1fc   : > { %3122 = vst [vmem:[%s4376_s1 + $0x8] sm:$0xff] %v3090_v62   ;;  %v2093_v22 = vsel %vm2092_vm11, %v3291_v49, %v2089_v34  ;;  %v1493_v32 = vmul.f32 %v3299_v16, %v4478_v21  ;;  %3304 = vtanh.f32 %v1312_v29  ;;  %v1504_v25 = vor.u32 1.1754944e-38, %v1503_v58  ;;  %v1254_v49 = vpop.f32.mrf.mxu3 }
 0x1fd   : > { %v2098_v31 = vsel %vm4486_vm7, %v2097_v15, %v2093_v22  ;;  %v2333_v59 = vadd.f32 %v2317_v38, %v2285_v61  ;;  %v2109_v35 = vand.u32 2147483647, %v4508_v23  ;;  %v2111_v40 = vand.u32 2147483648, %v4508_v23 }
 0x1fe   : > { %v2365_v19 = vmul.f32 %v2349_v27, %v2098_v31  ;;  %v1494_v56 = vsub.f32 1.0, %v1493_v32  ;;  %vm1498_vm14 = vweird.f32 %v3299_v16  ;;  %3306 = vpow2.f32 %v2962_v30  ;;  %v1112_v43 = vpop.f32.mrf.mxu0 }
 0x1ff   : > { %v2994_v42 = vmul.f32 -1.442695, %v1315_v51  ;;  %v1805_v57 = vand.u32 2147483647, %v4503_v37  ;;  %3308 = vpow2.f32 %v2978_v52  ;;  %vm1801_vm15 = vweird.f32 %v4503_v37  ;;  %vm4545_vm2 = vmor %vm1497_vm12, %vm1498_vm14  ;;  %v2302_v51 = vld [vmem:[%s3963_s14 + $0x28] sm:$0xff] }
 0x200   : > { %v3301_v14 = vpop.eup %3300  ;;  %v2381_v46 = vadd.f32 %v2365_v19, %v2333_v59  ;;  %v1495_v54 = vmul.f32 %v3299_v16, %v1494_v56  ;;  %vm2105_vm0 = vweird.f32 %v4508_v23  ;;  %v1808_v60 = vor.u32 1.1754944e-38, %v1807_v33  ;;  %v2350_v33 = vld [vmem:[%s3978_s4 + $0x28] sm:$0xff] }
 0x201   : > { %v3303_v44 = vpop.eup %3302  ;;  %v1797_v18 = vmul.f32 %v3301_v14, %v4503_v37  ;;  %3310 = vpow2.f32 %v2994_v42  ;;  %vm4538_vm1 = vcmp.eq.f32.partialorder %v2109_v35, 8.507059e+37  ;;  %v1255_v3 = vadd.f32 %v1254_v49, %v4069_v63 }
 0x202   : > { %v3305_v26 = vpop.eup %3304  ;;  %2397 = vst [vmem:[%s4278_s11 + $0x20] sm:$0xff] %v2381_v46  ;;  %v2101_v15 = vmul.f32 %v3303_v44, %v4508_v23  ;;  %v1496_v29 = vadd.f32 %v3299_v16, %v1495_v54  ;;  %v1110_v53 = vadd.f32 %v1109_v48, %v4071_v0  ;;  %v1159_v24 = vadd.f32 %v1158_v50, %v4073_v1 }
 0x203   : > { %v1798_v36 = vsub.f32 1.0, %v1797_v18  ;;  %v2112_v10 = vor.u32 1.1754944e-38, %v2111_v40  ;;  %vm4554_vm3 = vcmp.eq.f32.partialorder %v1805_v57, 8.507059e+37  ;;  %vm1802_vm4 = vweird.f32 %v3301_v14 }
 0x204   : > { %v2102_v41 = vsub.f32 1.0, %v2101_v15  ;;  %v1500_v20 = vsel %vm4545_vm2, %v3299_v16, %v1496_v29  ;;  %v3307_v21 = vpop.eup %3306  ;;  %vm2106_vm5 = vweird.f32 %v3303_v44  ;;  %v1317_v63 = vadd.f32 %v4152_v13, %v1110_v53  ;;  %vm1803_vm6 = vmor %vm1801_vm15, %vm1802_vm4  ;;  %v1256_v56 = vpop.f32.mrf.mxu3 }
 0x205   : > { %v1799_v47 = vmul.f32 %v3301_v14, %v1798_v36  ;;  %v3309_v0 = vpop.eup %3308  ;;  %v1505_v1 = vsel %vm4526_vm13, %v1504_v25, %v1500_v20  ;;  %v4561_v58 = vadd.f32 1.0, %v3307_v21  ;;  %v1318_v62 = vadd.f32 %v4156_v5, %v1159_v24  ;;  %vm2107_vm7 = vmor %vm2105_vm0, %vm2106_vm5 }
 0x206   : > { %v2103_v2 = vmul.f32 %v3303_v44, %v2102_v41  ;;  %3312 = vtanh.f32 %v2381_v46  ;;  %v4564_v16 = vadd.f32 1.0, %v3309_v0  ;;  %v1316_v27 = vadd.f32 %v4171_v55, %v1255_v3  ;;  %v1114_v3 = vpop.f32.mrf.mxu0 }
 0x207   : > { %v3311_v34 = vpop.eup %3310  ;;  %v1800_v38 = vadd.f32 %v3301_v14, %v1799_v47  ;;  %3314 = vrcp.f32 %v4561_v58  ;;  %v1208_v32 = vadd.f32 %v1207_v17, %v4077_v4  ;;  %v2286_v31 = vmul.f32 %v3305_v26, %v1505_v1  ;;  %v1161_v47 = vpop.f32.mrf.mxu1 }
 0x208   : > { %v2104_v30 = vadd.f32 %v3303_v44, %v2103_v2  ;;  %v4571_v22 = vadd.f32 1.0, %v3311_v34  ;;  %3316 = vrcp.f32 %v4564_v16  ;;  %v2963_v39 = vmul.f32 -1.442695, %v1317_v63  ;;  %v1210_v1 = vpop.f32.mrf.mxu2 }
 0x209   : > { %v1804_v52 = vsel %vm1803_vm6, %v3301_v14, %v1800_v38  ;;  %v2979_v59 = vmul.f32 -1.442695, %v1318_v62  ;;  %v1822_v23 = vand.u32 2147483648, %v4564_v16  ;;  %v1516_v42 = vand.u32 2147483647, %v4561_v58 }
 0x20a   : > { %v1809_v37 = vsel %vm4554_vm3, %v1808_v60, %v1804_v52  ;;  %v2108_v25 = vsel %vm2107_vm7, %v3303_v44, %v2104_v30  ;;  %3318 = vrcp.f32 %v4571_v22  ;;  %v2126_v40 = vand.u32 2147483648, %v4571_v22 }
 0x20b   : > { %v2113_v4 = vsel %vm4538_vm1, %v2112_v10, %v2108_v25  ;;  %v2318_v19 = vmul.f32 %v2302_v51, %v1809_v37  ;;  %3320 = vtanh.f32 %v1316_v27  ;;  %v1319_v49 = vadd.f32 %v4162_v45, %v1208_v32  ;;  %v2303_v25 = vld [vmem:[%s3963_s14 + $0x30] sm:$0xff] }
 0x20c   : > { %v2366_v35 = vmul.f32 %v2350_v33, %v2113_v4  ;;  %v4588_v14 = vpop.eup %3312  ;;  %v2124_v54 = vand.u32 2147483647, %v4571_v22  ;;  %v1518_v57 = vand.u32 2147483648, %v4561_v58  ;;  %3322 = vpow2.f32 %v2963_v39 }
 0x20d   : > { %v2334_v46 = vadd.f32 %v2318_v19, %v2286_v31  ;;  %v3315_v48 = vpop.eup %3314  ;;  %vm1816_vm8 = vweird.f32 %v4564_v16  ;;  %vm1512_vm9 = vweird.f32 %v4561_v58  ;;  %3324 = vpow2.f32 %v2979_v59 }
 0x20e   : > { %v1257_v50 = vadd.f32 %v1256_v56, %v4079_v6  ;;  %v3317_v44 = vpop.eup %3316  ;;  %v1508_v26 = vmul.f32 %v3315_v48, %v4561_v58  ;;  %v1823_v60 = vor.u32 1.1754944e-38, %v1822_v23  ;;  %vm2120_vm10 = vweird.f32 %v4571_v22  ;;  %v2351_v23 = vld [vmem:[%s3978_s4 + $0x30] sm:$0xff] }
 0x20f   : > { %v2382_v18 = vadd.f32 %v2366_v35, %v2334_v46  ;;  %v1820_v15 = vand.u32 2147483647, %v4564_v16  ;;  %v1812_v36 = vmul.f32 %v3317_v44, %v4564_v16  ;;  %v2127_v61 = vor.u32 1.1754944e-38, %v2126_v40 }
 0x210   : > { %v3319_v29 = vpop.eup %3318  ;;  %vm4599_vm11 = vcmp.eq.f32.partialorder %v1516_v42, 8.507059e+37  ;;  %v2995_v53 = vmul.f32 -1.442695, %v1319_v49  ;;  %v1509_v24 = vsub.f32 1.0, %v1508_v26  ;;  %vm4605_vm12 = vcmp.eq.f32.partialorder %v2124_v54, 8.507059e+37 }
 0x211   : > { %v3321_v6 = vpop.eup %3320  ;;  %2398 = vst [vmem:[%s4278_s11 + $0x28] sm:$0xff] %v2382_v18  ;;  %3326 = vtanh.f32 %v2382_v18  ;;  %v2116_v41 = vmul.f32 %v3319_v29, %v4571_v22  ;;  %v1519_v20 = vor.u32 1.1754944e-38, %v1518_v57  ;;  %v1813_v28 = vsub.f32 1.0, %v1812_v36 }
 0x212   : > { %vm1513_vm13 = vweird.f32 %v3315_v48  ;;  %3328 = vpow2.f32 %v2995_v53  ;;  %v1113_v21 = vadd.f32 %v1112_v43, %v4081_v7  ;;  %v3323_v63 = vpop.eup %3322  ;;  %vm1817_vm14 = vweird.f32 %v3317_v44  ;;  %v1163_v53 = vpop.f32.mrf.mxu1 }
 0x213   : > { %v2117_v17 = vsub.f32 1.0, %v2116_v41  ;;  %v1510_v0 = vmul.f32 %v3315_v48, %v1509_v24  ;;  %vm4610_vm15 = vcmp.eq.f32.partialorder %v1820_v15, 8.507059e+37  ;;  %v3325_v62 = vpop.eup %3324  ;;  %v1814_v34 = vmul.f32 %v3317_v44, %v1813_v28  ;;  %vm4623_vm1 = vmor %vm1512_vm9, %vm1513_vm13 }
 0x214   : > { %vm2121_vm0 = vweird.f32 %v3319_v29  ;;  %v4614_v38 = vadd.f32 1.0, %v3323_v63  ;;  %v1320_v27 = vadd.f32 %v4171_v55, %v1257_v50  ;;  %v4617_v51 = vadd.f32 1.0, %v3325_v62  ;;  %vm1818_vm2 = vmor %vm1816_vm8, %vm1817_vm14 }
 0x215   : > { %v2118_v30 = vmul.f32 %v3319_v29, %v2117_v17  ;;  %v1511_v7 = vadd.f32 %v3315_v48, %v1510_v0  ;;  %v1162_v32 = vadd.f32 %v1161_v47, %v4083_v8  ;;  %v1815_v31 = vadd.f32 %v3317_v44, %v1814_v34  ;;  %vm2122_vm3 = vmor %vm2120_vm10, %vm2121_vm0  ;;  %v1259_v47 = vpop.f32.mrf.mxu3 }
 0x216   : > { %3330 = vrcp.f32 %v4614_v38  ;;  %v1321_v33 = vadd.f32 %v4152_v13, %v1113_v21  ;;  %v1211_v39 = vadd.f32 %v1210_v1, %v4085_v9  ;;  %v1531_v59 = vand.u32 2147483647, %v4614_v38 }
 0x217   : > { %v3327_v37 = vpop.eup %3326  ;;  %v2119_v8 = vadd.f32 %v3319_v29, %v2118_v30  ;;  %v1515_v58 = vsel %vm4623_vm1, %v3315_v48, %v1511_v7  ;;  %3332 = vrcp.f32 %v4617_v51  ;;  %v1819_v16 = vsel %vm1818_vm2, %v3317_v44, %v1815_v31 }
 0x218   : > { %v3329_v4 = vpop.eup %3328  ;;  %v3095_v19 = vpack.c.bf16 %v3327_v37, %v4588_v14  ;;  %v1520_v9 = vsel %vm4599_vm11, %v1519_v20, %v1515_v58  ;;  %v1837_v56 = vand.u32 2147483648, %v4617_v51  ;;  %v1824_v35 = vsel %vm4610_vm15, %v1823_v60, %v1819_v16  ;;  %v5305_v60 = vld [vmem:[#allocation26_spill] sm:$0xff] }
 0x219   : > { %v2123_v40 = vsel %vm2122_vm3, %v3319_v29, %v2119_v8  ;;  %v2287_v42 = vmul.f32 %v3321_v6, %v1520_v9  ;;  %v4648_v49 = vadd.f32 1.0, %v3329_v4  ;;  %v2319_v22 = vmul.f32 %v2303_v25, %v1824_v35  ;;  %v5304_v9 = vld [vmem:[#allocation25_spill] sm:$0xff] }
 0x21a   : > { %3123 = vst [vmem:[%s4376_s1 + $0x10] sm:$0xff] %v3095_v19   ;;  %v2128_v14 = vsel %vm4605_vm12, %v2127_v61, %v2123_v40  ;;  %3334 = vtanh.f32 %v1320_v27  ;;  %v1322_v54 = vadd.f32 %v4156_v5, %v1162_v32  ;;  %vm1831_vm4 = vweird.f32 %v4617_v51 }
 0x21b   : > { %v2367_v46 = vmul.f32 %v2351_v23, %v2128_v14  ;;  %3336 = vrcp.f32 %v4648_v49  ;;  %v2335_v48 = vadd.f32 %v2319_v22, %v2287_v42  ;;  %vm1527_vm5 = vweird.f32 %v4614_v38  ;;  %v2352_v14 = vld [vmem:[%s3978_s4 + $0x38] sm:$0xff] }
 0x21c   : > { %v3331_v57 = vpop.eup %3330  ;;  %v1323_v50 = vadd.f32 %v4162_v45, %v1211_v39  ;;  %v1838_v26 = vor.u32 1.1754944e-38, %v1837_v56  ;;  %vm4659_vm6 = vcmp.eq.f32.partialorder %v1531_v59, 8.507059e+37  ;;  %v2964_v15 = vmul.f32 -1.442695, %v1321_v33  ;;  %v2304_v33 = vld [vmem:[%s3963_s14 + $0x38] sm:$0xff]  ;;  %v5303_v39 = vld [vmem:[#allocation24_spill] sm:$0xff] }
 0x21d   : > { %v3333_v44 = vpop.eup %3332  ;;  %v1523_v18 = vmul.f32 %v3331_v57, %v4614_v38  ;;  %v2383_v43 = vadd.f32 %v2367_v46, %v2335_v48  ;;  %v2139_v36 = vand.u32 2147483647, %v4648_v49  ;;  %v2141_v61 = vand.u32 2147483648, %v4648_v49  ;;  %v1261_v48 = vpop.f32.mrf.mxu3 }
 0x21e   : > { %v1827_v29 = vmul.f32 %v3333_v44, %v4617_v51  ;;  %v1533_v24 = vand.u32 2147483648, %v4614_v38  ;;  %v1835_v41 = vand.u32 2147483647, %v4617_v51  ;;  %3338 = vpow2.f32 %v2964_v15 }
 0x21f   : > { %v1524_v6 = vsub.f32 1.0, %v1523_v18  ;;  %2399 = vst [vmem:[%s4278_s11 + $0x30] sm:$0xff] %v2383_v43  ;;  %vm2135_vm7 = vweird.f32 %v4648_v49  ;;  %v2980_v28 = vmul.f32 -1.442695, %v1322_v54  ;;  %v2996_v21 = vmul.f32 -1.442695, %v1323_v50 }
 0x220   : > { %v3335_v10 = vpop.eup %3334  ;;  %v1828_v20 = vsub.f32 1.0, %v1827_v29  ;;  %vm1528_vm8 = vweird.f32 %v3331_v57  ;;  %v1115_v0 = vadd.f32 %v1114_v3, %v4089_v11  ;;  %v1164_v2 = vadd.f32 %v1163_v53, %v4091_v12  ;;  %v1212_v12 = vpop.f32.mrf.mxu2 }
 0x221   : > { %v3337_v63 = vpop.eup %3336  ;;  %v1525_v17 = vmul.f32 %v3331_v57, %v1524_v6  ;;  %vm1832_vm9 = vweird.f32 %v3333_v44  ;;  %3340 = vpow2.f32 %v2980_v28  ;;  %v1534_v27 = vor.u32 1.1754944e-38, %v1533_v24  ;;  %vm1529_vm10 = vmor %vm1527_vm5, %vm1528_vm8 }
 0x222   : > { %v1829_v1 = vmul.f32 %v3333_v44, %v1828_v20  ;;  %v2131_v62 = vmul.f32 %v3337_v63, %v4648_v49  ;;  %3342 = vpow2.f32 %v2996_v21  ;;  %v1325_v30 = vadd.f32 %v4152_v13, %v1115_v0  ;;  %vm1833_vm12 = vmor %vm1831_vm4, %vm1832_vm9 }
 0x223   : > { %v1526_v34 = vadd.f32 %v3331_v57, %v1525_v17  ;;  %vm1836_vm11 = vcmp.eq.f32.partialorder %v1835_v41, 8.507059e+37  ;;  %v1326_v11 = vadd.f32 %v4156_v5, %v1164_v2  ;;  %vm2136_vm13 = vweird.f32 %v3337_v63 }
 0x224   : > { %v2132_v7 = vsub.f32 1.0, %v2131_v62  ;;  %v1830_v32 = vadd.f32 %v3333_v44, %v1829_v1  ;;  %v3339_v52 = vpop.eup %3338  ;;  %v1260_v37 = vadd.f32 %v1259_v47, %v5303_v39  ;;  %v2965_v8 = vmul.f32 -1.442695, %v1325_v30  ;;  %vm2137_vm14 = vmor %vm2135_vm7, %vm2136_vm13 }
 0x225   : > { %v1530_v31 = vsel %vm1529_vm10, %v3331_v57, %v1526_v34  ;;  %v4683_v59 = vadd.f32 1.0, %v3339_v52  ;;  %v2981_v19 = vmul.f32 -1.442695, %v1326_v11  ;;  %v1213_v51 = vadd.f32 %v1212_v12, %v5304_v9  ;;  %v1117_v34 = vpop.f32.mrf.mxu0 }
 0x226   : > { %v2133_v58 = vmul.f32 %v3337_v63, %v2132_v7  ;;  %v1535_v38 = vsel %vm4659_vm6, %v1534_v27, %v1530_v31  ;;  %v1834_v25 = vsel %vm1833_vm12, %v3333_v44, %v1830_v32  ;;  %3344 = vpow2.f32 %v2965_v8 }
 0x227   : > { %v1839_v4 = vsel %vm1836_vm11, %v1838_v26, %v1834_v25  ;;  %v3341_v16 = vpop.eup %3340  ;;  %v2288_v56 = vmul.f32 %v3335_v10, %v1535_v38  ;;  %3346 = vrcp.f32 %v4683_v59  ;;  %v2142_v42 = vor.u32 1.1754944e-38, %v2141_v61  ;;  %v5312_v25 = vld [vmem:[#allocation27_spill] sm:$0xff] }
 0x228   : > { %v2134_v23 = vadd.f32 %v3337_v63, %v2133_v58  ;;  %v2320_v35 = vmul.f32 %v2304_v33, %v1839_v4  ;;  %v3343_v40 = vpop.eup %3342  ;;  %v4691_v22 = vadd.f32 1.0, %v3341_v16  ;;  %v1324_v46 = vadd.f32 %v4171_v55, %v1260_v37 }
 0x229   : > { %3348 = vpow2.f32 %v2981_v19  ;;  %vm2140_vm15 = vcmp.eq.f32.partialorder %v2139_v36, 8.507059e+37  ;;  %v4694_v57 = vadd.f32 1.0, %v3343_v40  ;;  %v1327_v49 = vadd.f32 %v4162_v45, %v1213_v51 }
 0x22a   : > { %3350 = vtanh.f32 %v2383_v43  ;;  %v2138_v54 = vsel %vm2137_vm14, %v3337_v63, %v2134_v23  ;;  %v2336_v44 = vadd.f32 %v2320_v35, %v2288_v56  ;;  %v1262_v15 = vadd.f32 %v1261_v48, %v5305_v60  ;;  %v1166_v23 = vpop.f32.mrf.mxu1  ;;  %v2305_v48 = vld [vmem:[%s3963_s14 + $0x40] sm:$0xff] }
 0x22b   : > { %v2143_v50 = vsel %vm2140_vm15, %v2142_v42, %v2138_v54  ;;  %3352 = vrcp.f32 %v4691_v22  ;;  %v1852_v36 = vand.u32 2147483648, %v4691_v22  ;;  %v1546_v61 = vand.u32 2147483647, %v4683_v59  ;;  %v5313_v60 = vld [vmem:[#allocation28_spill] sm:$0xff] }
 0x22c   : > { %v2368_v18 = vmul.f32 %v2352_v14, %v2143_v50  ;;  %3354 = vrcp.f32 %v4694_v57  ;;  %v3345_v26 = vpop.eup %3344  ;;  %v2154_v24 = vand.u32 2147483647, %v4694_v57  ;;  %vm1542_vm0 = vweird.f32 %v4683_v59  ;;  %v1215_v14 = vpop.f32.mrf.mxu2 }
 0x22d   : > { %3356 = vtanh.f32 %v1324_v46  ;;  %v3347_v43 = vpop.eup %3346  ;;  %v4702_v3 = vadd.f32 1.0, %v3345_v26  ;;  %v1548_v41 = vand.u32 2147483648, %v4683_v59  ;;  %vm1846_vm1 = vweird.f32 %v4691_v22 }
 0x22e   : > { %v2384_v29 = vadd.f32 %v2368_v18, %v2336_v44  ;;  %v1538_v6 = vmul.f32 %v3347_v43, %v4683_v59  ;;  %v2156_v20 = vand.u32 2147483648, %v4694_v57  ;;  %v2997_v21 = vmul.f32 -1.442695, %v1327_v49  ;;  %v2353_v49 = vld [vmem:[%s3978_s4 + $0x40] sm:$0xff] }
 0x22f   : > { %v3349_v53 = vpop.eup %3348  ;;  %vm2150_vm2 = vweird.f32 %v4694_v57  ;;  %v1850_v17 = vand.u32 2147483647, %v4691_v22  ;;  %v1853_v1 = vor.u32 1.1754944e-38, %v1852_v36  ;;  %vm4717_vm3 = vcmp.eq.f32.partialorder %v1546_v61, 8.507059e+37 }
 0x230   : > { %v3351_v10 = vpop.eup %3350  ;;  %2400 = vst [vmem:[%s4278_s11 + $0x38] sm:$0xff] %v2384_v29  ;;  %3358 = vtanh.f32 %v2384_v29  ;;  %v4711_v28 = vadd.f32 1.0, %v3349_v53  ;;  %v1539_v63 = vsub.f32 1.0, %v1538_v6  ;;  %vm1543_vm4 = vweird.f32 %v3347_v43  ;;  %v1264_v53 = vpop.f32.mrf.mxu3 }
 0x231   : > { %v3353_v47 = vpop.eup %3352  ;;  %3360 = vrcp.f32 %v4702_v3  ;;  %v1549_v32 = vor.u32 1.1754944e-38, %v1548_v41  ;;  %vm4723_vm5 = vcmp.eq.f32.partialorder %v2154_v24, 8.507059e+37  ;;  %v2157_v52 = vor.u32 1.1754944e-38, %v2156_v20  ;;  %vm1544_vm8 = vmor %vm1542_vm0, %vm1543_vm4 }
 0x232   : > { %v3355_v0 = vpop.eup %3354  ;;  %v1842_v2 = vmul.f32 %v3353_v47, %v4691_v22  ;;  %3362 = vrcp.f32 %v4711_v28  ;;  %v1540_v7 = vmul.f32 %v3347_v43, %v1539_v63  ;;  %vm4727_vm6 = vcmp.eq.f32.partialorder %v1850_v17, 8.507059e+37 }
 0x233   : > { %v3357_v27 = vpop.eup %3356  ;;  %v2146_v30 = vmul.f32 %v3355_v0, %v4694_v57  ;;  %3364 = vpow2.f32 %v2997_v21  ;;  %v1328_v37 = vadd.f32 %v4171_v55, %v1262_v15  ;;  %vm1847_vm7 = vweird.f32 %v3353_v47 }
 0x234   : > { %v1843_v11 = vsub.f32 1.0, %v1842_v2  ;;  %v1541_v33 = vadd.f32 %v3347_v43, %v1540_v7  ;;  %vm1557_vm9 = vweird.f32 %v4702_v3  ;;  %v1561_v38 = vand.u32 2147483647, %v4702_v3  ;;  %vm1848_vm11 = vmor %vm1846_vm1, %vm1847_vm7 }
 0x235   : > { %v2147_v31 = vsub.f32 1.0, %v2146_v30  ;;  %v1118_v4 = vadd.f32 %v1117_v34, %v5312_v25  ;;  %vm2151_vm10 = vweird.f32 %v3355_v0  ;;  %v1867_v42 = vand.u32 2147483648, %v4711_v28  ;;  %v5318_v34 = vld [vmem:[#allocation29_spill] sm:$0xff] }
 0x236   : > { %v3359_v8 = vpop.eup %3358  ;;  %v1844_v58 = vmul.f32 %v3353_v47, %v1843_v11  ;;  %v1545_v16 = vsel %vm1544_vm8, %v3347_v43, %v1541_v33  ;;  %vm2152_vm13 = vmor %vm2150_vm2, %vm2151_vm10  ;;  %vm1861_vm14 = vweird.f32 %v4711_v28  ;;  %v1167_v15 = vadd.f32 %v1166_v23, %v5313_v60  ;;  %v5324_v23 = vld [vmem:[#allocation32_spill] sm:$0xff]  ;;  %v2306_v60 = vld [vmem:[%s3963_s14 + $0x48] sm:$0xff] }
 0x237   : > { %v4737_v19 = vpop.eup %3360  ;;  %v3100_v9 = vpack.c.bf16 %v3359_v8, %v3351_v10  ;;  %v2148_v51 = vmul.f32 %v3355_v0, %v2147_v31  ;;  %v1550_v59 = vsel %vm4717_vm3, %v1549_v32, %v1545_v16  ;;  %v1329_v22 = vadd.f32 %v4152_v13, %v1118_v4  ;;  %v1119_v10 = vpop.f32.mrf.mxu0 }
 0x238   : > { %v4739_v56 = vpop.eup %3362  ;;  %v1845_v35 = vadd.f32 %v3353_v47, %v1844_v58  ;;  %v1553_v40 = vmul.f32 %v4737_v19, %v4702_v3  ;;  %v2289_v54 = vmul.f32 %v3357_v27, %v1550_v59  ;;  %vm1558_vm12 = vweird.f32 %v4737_v19  ;;  %v1168_v31 = vpop.f32.mrf.mxu1 }
 0x239   : > { %3124 = vst [vmem:[%s4376_s1 + $0x18] sm:$0xff] %v3100_v9   ;;  %v2149_v46 = vadd.f32 %v3355_v0, %v2148_v51  ;;  %v1857_v50 = vmul.f32 %v4739_v56, %v4711_v28  ;;  %v3365_v44 = vpop.eup %3364  ;;  %v2966_v41 = vmul.f32 -1.442695, %v1329_v22  ;;  %vm4777_vm15 = vmor %vm1557_vm9, %vm1558_vm12  ;;  %vm4781_vm0 = vcmp.eq.f32.partialorder %v1561_v38, 8.507059e+37  ;;  %v1217_v8 = vpop.f32.mrf.mxu2 }
 0x23a   : > { %v1849_v18 = vsel %vm1848_vm11, %v3353_v47, %v1845_v35  ;;  %v1554_v26 = vsub.f32 1.0, %v1553_v40  ;;  %v4763_v61 = vadd.f32 1.0, %v3365_v44  ;;  %v1563_v47 = vand.u32 2147483648, %v4702_v3  ;;  %v5328_v44 = vld [vmem:[#allocation30_spill] sm:$0xff] }
 0x23b   : > { %v1854_v43 = vsel %vm4727_vm6, %v1853_v1, %v1849_v18  ;;  %v2153_v29 = vsel %vm2152_vm13, %v3355_v0, %v2149_v46  ;;  %v1858_v36 = vsub.f32 1.0, %v1857_v50  ;;  %v1865_v0 = vand.u32 2147483647, %v4711_v28  ;;  %v2354_v1 = vld [vmem:[%s3978_s4 + $0x48] sm:$0xff] }
 0x23c   : > { %v2158_v57 = vsel %vm4723_vm5, %v2157_v52, %v2153_v29  ;;  %v2321_v6 = vmul.f32 %v2305_v48, %v1854_v43  ;;  %v1555_v24 = vmul.f32 %v4737_v19, %v1554_v26  ;;  %3366 = vrcp.f32 %v4763_v61 }
 0x23d   : > { %v2369_v20 = vmul.f32 %v2353_v49, %v2158_v57  ;;  %v1859_v21 = vmul.f32 %v4739_v56, %v1858_v36  ;;  %3368 = vtanh.f32 %v1328_v37  ;;  %v1330_v62 = vadd.f32 %v4156_v5, %v1167_v15  ;;  %v5329_v36 = vld [vmem:[#allocation34_spill] sm:$0xff] }
 0x23e   : > { %v2337_v63 = vadd.f32 %v2321_v6, %v2289_v54  ;;  %v1556_v17 = vadd.f32 %v4737_v19, %v1555_v24  ;;  %3370 = vpow2.f32 %v2966_v41  ;;  %v1216_v27 = vadd.f32 %v1215_v14, %v5318_v34  ;;  %v5327_v14 = vld [vmem:[#allocation33_spill] sm:$0xff]  ;;  %v1266_v54 = vpop.f32.mrf.mxu3  ;;  %v5330_v41 = vld [vmem:[#allocation35_spill] sm:$0xff] }
 0x23f   : > { %vm1862_vm1 = vweird.f32 %v4739_v56  ;;  %v1860_v7 = vadd.f32 %v4739_v56, %v1859_v21  ;;  %v2169_v32 = vand.u32 2147483647, %v4763_v61  ;;  %v1564_v11 = vor.u32 1.1754944e-38, %v1563_v47  ;;  %v1122_v49 = vpop.f32.mrf.mxu0 }
 0x240   : > { %v2385_v30 = vadd.f32 %v2369_v20, %v2337_v63  ;;  %v1560_v3 = vsel %vm4777_vm15, %v4737_v19, %v1556_v17  ;;  %v2982_v12 = vmul.f32 -1.442695, %v1330_v62  ;;  %v1331_v52 = vadd.f32 %v4162_v45, %v1216_v27  ;;  %vm4805_vm4 = vmor %vm1861_vm14, %vm1862_vm1  ;;  %v5323_v19 = vld [vmem:[#allocation31_spill] sm:$0xff] }
 0x241   : > { %v1868_v33 = vor.u32 1.1754944e-38, %v1867_v42  ;;  %vm2165_vm2 = vweird.f32 %v4763_v61  ;;  %v2171_v39 = vand.u32 2147483648, %v4763_v61  ;;  %vm4797_vm3 = vcmp.eq.f32.partialorder %v1865_v0, 8.507059e+37 }
 0x242   : > { %2401 = vst [vmem:[%s4278_s11 + $0x40] sm:$0xff] %v2385_v30  ;;  %v3367_v58 = vpop.eup %3366  ;;  %v1565_v25 = vsel %vm4781_vm0, %v1564_v11, %v1560_v3  ;;  %3372 = vpow2.f32 %v2982_v12  ;;  %v2998_v4 = vmul.f32 -1.442695, %v1331_v52  ;;  %v1120_v9 = vadd.f32 %v1119_v10, %v5323_v19  ;;  %v1171_v11 = vpop.f32.mrf.mxu1 }
 0x243   : > { %v3369_v51 = vpop.eup %3368  ;;  %3374 = vtanh.f32 %v2385_v30  ;;  %v2161_v16 = vmul.f32 %v3367_v58, %v4763_v61  ;;  %v1864_v28 = vsel %vm4805_vm4, %v4739_v56, %v1860_v7  ;;  %v1169_v59 = vadd.f32 %v1168_v31, %v5324_v23 }
 0x244   : > { %v3371_v35 = vpop.eup %3370  ;;  %vm4817_vm5 = vcmp.eq.f32.partialorder %v2169_v32, 8.507059e+37  ;;  %3376 = vpow2.f32 %v2998_v4  ;;  %v1333_v42 = vadd.f32 %v4152_v13, %v1120_v9  ;;  %v1218_v46 = vadd.f32 %v1217_v8, %v5327_v14  ;;  %v5333_v4 = vld [vmem:[#allocation36_spill] sm:$0xff] }
 0x245   : > { %v2162_v48 = vsub.f32 1.0, %v2161_v16  ;;  %v4823_v50 = vadd.f32 1.0, %v3371_v35  ;;  %v1265_v18 = vadd.f32 %v1264_v53, %v5328_v44  ;;  %v1334_v56 = vadd.f32 %v4156_v5, %v1169_v59 }
 0x246   : > { %v1869_v26 = vsel %vm4797_vm3, %v1868_v33, %v1864_v28  ;;  %v2290_v22 = vmul.f32 %v3369_v51, %v1565_v25  ;;  %v2967_v15 = vmul.f32 -1.442695, %v1333_v42  ;;  %v1335_v43 = vadd.f32 %v4162_v45, %v1218_v46 }
 0x247   : > { %v2163_v29 = vmul.f32 %v3367_v58, %v2162_v48  ;;  %vm2166_vm6 = vweird.f32 %v3367_v58  ;;  %3378 = vrcp.f32 %v4823_v50  ;;  %v1267_v57 = vadd.f32 %v1266_v54, %v5329_v36 }
 0x248   : > { %v3373_v6 = vpop.eup %3372  ;;  %3380 = vpow2.f32 %v2967_v15  ;;  %v2983_v53 = vmul.f32 -1.442695, %v1334_v56  ;;  %v2999_v24 = vmul.f32 -1.442695, %v1335_v43  ;;  %v1123_v10 = vadd.f32 %v1122_v49, %v5330_v41  ;;  %vm2167_vm7 = vmor %vm2165_vm2, %vm2166_vm6 }
 0x249   : > { %v4834_v20 = vpop.eup %3374  ;;  %v2164_v21 = vadd.f32 %v3367_v58, %v2163_v29  ;;  %v2322_v47 = vmul.f32 %v2306_v60, %v1869_v26  ;;  %v4836_v63 = vadd.f32 1.0, %v3373_v6  ;;  %v1332_v17 = vadd.f32 %v4171_v55, %v1265_v18 }
 0x24a   : > { %v3377_v0 = vpop.eup %3376  ;;  %v2172_v2 = vor.u32 1.1754944e-38, %v2171_v39  ;;  %v1576_v62 = vand.u32 2147483647, %v4823_v50  ;;  %v1578_v34 = vand.u32 2147483648, %v4823_v50  ;;  %3382 = vpow2.f32 %v2983_v53  ;;  %v1173_v60 = vpop.f32.mrf.mxu1 }
 0x24b   : > { %v2168_v27 = vsel %vm2167_vm7, %v3367_v58, %v2164_v21  ;;  %3384 = vrcp.f32 %v4836_v63  ;;  %v1882_v30 = vand.u32 2147483648, %v4836_v63  ;;  %v1336_v3 = vadd.f32 %v4171_v55, %v1267_v57 }
 0x24c   : > { %v2173_v7 = vsel %vm4817_vm5, %v2172_v2, %v2168_v27  ;;  %v4849_v32 = vadd.f32 1.0, %v3377_v0  ;;  %3386 = vpow2.f32 %v2999_v24  ;;  %v1337_v61 = vadd.f32 %v4152_v13, %v1123_v10 }
 0x24d   : > { %v3379_v12 = vpop.eup %3378  ;;  %v2338_v52 = vadd.f32 %v2322_v47, %v2290_v22  ;;  %v2370_v31 = vmul.f32 %v2354_v1, %v2173_v7  ;;  %vm1572_vm8 = vweird.f32 %v4823_v50  ;;  %3388 = vtanh.f32 %v1332_v17 }
 0x24e   : > { %v3381_v33 = vpop.eup %3380  ;;  %v1568_v39 = vmul.f32 %v3379_v12, %v4823_v50  ;;  %3390 = vrcp.f32 %v4849_v32  ;;  %vm4855_vm9 = vcmp.eq.f32.partialorder %v1576_v62, 8.507059e+37  ;;  %v1579_v8 = vor.u32 1.1754944e-38, %v1578_v34  ;;  %v2307_v62 = vld [vmem:[%s3963_s14 + $0x50] sm:$0xff] }
 0x24f   : > { %v2386_v58 = vadd.f32 %v2370_v31, %v2338_v52  ;;  %v4859_v38 = vor.u32 1.1754944e-38, %v1882_v30  ;;  %v1880_v25 = vand.u32 2147483647, %v4836_v63  ;;  %v1172_v19 = vadd.f32 %v1171_v11, %v5333_v4  ;;  %v1220_v31 = vpop.f32.mrf.mxu2 }
 0x250   : > { %v3383_v9 = vpop.eup %3382  ;;  %v1569_v51 = vsub.f32 1.0, %v1568_v39  ;;  %vm1876_vm10 = vweird.f32 %v4836_v63  ;;  %v4864_v16 = vadd.f32 1.0, %v3381_v33  ;;  %3392 = vtanh.f32 %v1336_v3  ;;  %v2355_v39 = vld [vmem:[%s3978_s4 + $0x50] sm:$0xff] }
 0x251   : > { %v2968_v28 = vmul.f32 -1.442695, %v1337_v61  ;;  %v3385_v23 = vpop.eup %3384  ;;  %2402 = vst [vmem:[%s4278_s11 + $0x48] sm:$0xff] %v2386_v58  ;;  %3394 = vtanh.f32 %v2386_v58  ;;  %v2184_v59 = vand.u32 2147483647, %v4849_v32  ;;  %v2186_v35 = vand.u32 2147483648, %v4849_v32 }
 0x252   : > { %v4869_v40 = vadd.f32 1.0, %v3383_v9  ;;  %v3387_v42 = vpop.eup %3386  ;;  %v1872_v14 = vmul.f32 %v3385_v23, %v4836_v63  ;;  %v1570_v46 = vmul.f32 %v3379_v12, %v1569_v51  ;;  %vm1573_vm11 = vweird.f32 %v3379_v12 }
 0x253   : > { %3396 = vrcp.f32 %v4864_v16  ;;  %v3389_v54 = vpop.eup %3388  ;;  %vm2180_vm12 = vweird.f32 %v4849_v32  ;;  %vm4874_vm13 = vcmp.eq.f32.partialorder %v1880_v25, 8.507059e+37  ;;  %v4879_v44 = vadd.f32 1.0, %v3387_v42  ;;  %vm1574_vm15 = vmor %vm1572_vm8, %vm1573_vm11 }
 0x254   : > { %3398 = vrcp.f32 %v4869_v40  ;;  %v3391_v18 = vpop.eup %3390  ;;  %v1873_v56 = vsub.f32 1.0, %v1872_v14  ;;  %v1571_v49 = vadd.f32 %v3379_v12, %v1570_v46  ;;  %v1897_v26 = vand.u32 2147483648, %v4869_v40 }
 0x255   : > { %3400 = vpow2.f32 %v2968_v28  ;;  %v2176_v22 = vmul.f32 %v3391_v18, %v4849_v32  ;;  %vm4883_vm14 = vcmp.eq.f32.partialorder %v2184_v59, 8.507059e+37  ;;  %v2187_v15 = vor.u32 1.1754944e-38, %v2186_v35 }
 0x256   : > { %3402 = vrcp.f32 %v4879_v44  ;;  %v1591_v43 = vand.u32 2147483647, %v4864_v16  ;;  %v4892_v29 = vpop.eup %3392  ;;  %v1874_v36 = vmul.f32 %v3385_v23, %v1873_v56  ;;  %vm1877_vm0 = vweird.f32 %v3385_v23 }
 0x257   : > { %v1575_v57 = vsel %vm1574_vm15, %v3379_v12, %v1571_v49  ;;  %v1338_v6 = vadd.f32 %v4156_v5, %v1172_v19  ;;  %v3395_v53 = vpop.eup %3394  ;;  %v2177_v24 = vsub.f32 1.0, %v2176_v22  ;;  %vm2181_vm1 = vweird.f32 %v3391_v18  ;;  %vm4904_vm4 = vmor %vm1876_vm10, %vm1877_vm0  ;;  %v2308_v22 = vld [vmem:[%s3963_s14 + $0x58] sm:$0xff]  ;;  %v1222_v2 = vpop.f32.mrf.mxu2 }
 0x258   : > { %v1580_v41 = vsel %vm4855_vm9, %v1579_v8, %v1575_v57  ;;  %vm1587_vm2 = vweird.f32 %v4864_v16  ;;  %v3105_v10 = vpack.c.bf16 %v3395_v53, %v4834_v20  ;;  %v1875_v21 = vadd.f32 %v3385_v23, %v1874_v36  ;;  %vm2182_vm9 = vmor %vm2180_vm12, %vm2181_vm1 }
 0x259   : > { %v3397_v50 = vpop.eup %3396  ;;  %vm1891_vm3 = vweird.f32 %v4869_v40  ;;  %v1898_v47 = vor.u32 1.1754944e-38, %v1897_v26  ;;  %v2199_v17 = vand.u32 2147483647, %v4879_v44  ;;  %v2178_v1 = vmul.f32 %v3391_v18, %v2177_v24 }
 0x25a   : > { %v3399_v0 = vpop.eup %3398  ;;  %v1583_v34 = vmul.f32 %v3397_v50, %v4864_v16  ;;  %v2201_v20 = vand.u32 2147483648, %v4879_v44  ;;  %vm4911_vm5 = vcmp.eq.f32.partialorder %v1591_v43, 8.507059e+37  ;;  %3125 = vst [vmem:[%s4376_s1 + $0x20] sm:$0xff] %v3105_v10   ;;  %v1879_v63 = vsel %vm4904_vm4, %v3385_v23, %v1875_v21  ;;  %v1269_v23 = vpop.f32.mrf.mxu3  ;;  %v5343_v21 = vld [vmem:[#allocation39_spill] sm:$0xff] }
 0x25b   : > { %v3401_v30 = vpop.eup %3400  ;;  %v2291_v3 = vmul.f32 %v3389_v54, %v1580_v41  ;;  %v1887_v7 = vmul.f32 %v3399_v0, %v4869_v40  ;;  %vm2195_vm6 = vweird.f32 %v4879_v44  ;;  %vm1588_vm7 = vweird.f32 %v3397_v50 }
 0x25c   : > { %v3403_v61 = vpop.eup %3402  ;;  %v2179_v11 = vadd.f32 %v3391_v18, %v2178_v1  ;;  %v1884_v12 = vsel %vm4874_vm13, %v4859_v38, %v1879_v63  ;;  %v1584_v52 = vsub.f32 1.0, %v1583_v34  ;;  %vm1892_vm8 = vweird.f32 %v3399_v0  ;;  %v1124_v38 = vpop.f32.mrf.mxu0  ;;  %vm1589_vm11 = vmor %vm1587_vm2, %vm1588_vm7  ;;  %v5345_v63 = vld [vmem:[#allocation38_spill] sm:$0xff] }
 0x25d   : > { %v2323_v33 = vmul.f32 %v2307_v62, %v1884_v12  ;;  %v1888_v37 = vsub.f32 1.0, %v1887_v7  ;;  %v2191_v8 = vmul.f32 %v3403_v61, %v4879_v44  ;;  %v1593_v58 = vand.u32 2147483648, %v4864_v16  ;;  %vm1893_vm12 = vmor %vm1891_vm3, %vm1892_vm8  ;;  %v5346_v7 = vld [vmem:[#allocation41_spill] sm:$0xff] }
 0x25e   : > { %v2183_v25 = vsel %vm2182_vm9, %v3391_v18, %v2179_v11  ;;  %vm2196_vm10 = vweird.f32 %v3403_v61  ;;  %v1585_v4 = vmul.f32 %v3397_v50, %v1584_v52  ;;  %v1895_v19 = vand.u32 2147483647, %v4869_v40  ;;  %v5342_v18 = vld [vmem:[#allocation37_spill] sm:$0xff] }
 0x25f   : > { %v2188_v9 = vsel %vm4883_vm14, %v2187_v15, %v2183_v25  ;;  %v2339_v51 = vadd.f32 %v2323_v33, %v2291_v3  ;;  %v1889_v28 = vmul.f32 %v3399_v0, %v1888_v37  ;;  %v2192_v32 = vsub.f32 1.0, %v2191_v8  ;;  %vm2197_vm14 = vmor %vm2195_vm6, %vm2196_vm10  ;;  %v5347_v37 = vld [vmem:[#allocation43_spill] sm:$0xff]  ;;  %v5348_v25 = vld [vmem:[#allocation42_spill] sm:$0xff] }
 0x260   : > { %v2371_v59 = vmul.f32 %v2355_v39, %v2188_v9  ;;  %v1586_v35 = vadd.f32 %v3397_v50, %v1585_v4  ;;  %v4932_v42 = vadd.f32 1.0, %v3401_v30  ;;  %v2984_v14 = vmul.f32 -1.442695, %v1338_v6  ;;  %v2356_v6 = vld [vmem:[%s3978_s4 + $0x58] sm:$0xff] }
 0x261   : > { %v2193_v46 = vmul.f32 %v3403_v61, %v2192_v32  ;;  %v1594_v54 = vor.u32 1.1754944e-38, %v1593_v58  ;;  %v1890_v48 = vadd.f32 %v3399_v0, %v1889_v28  ;;  %v1221_v56 = vadd.f32 %v1220_v31, %v5342_v18 }
 0x262   : > { %v2387_v49 = vadd.f32 %v2371_v59, %v2339_v51  ;;  %v1590_v26 = vsel %vm1589_vm11, %v3397_v50, %v1586_v35  ;;  %vm1896_vm13 = vcmp.eq.f32.partialorder %v1895_v19, 8.507059e+37  ;;  %3404 = vrcp.f32 %v4932_v42  ;;  %v1271_v11 = vpop.f32.mrf.mxu3  ;;  %v1176_v19 = vpop.f32.mrf.mxu1 }
 0x263   : > { %v2194_v15 = vadd.f32 %v3403_v61, %v2193_v46  ;;  %v1595_v16 = vsel %vm4911_vm5, %v1594_v54, %v1590_v26  ;;  %v1894_v43 = vsel %vm1893_vm12, %v3399_v0, %v1890_v48  ;;  %3406 = vpow2.f32 %v2984_v14  ;;  %v5349_v14 = vld [vmem:[#allocation44_spill] sm:$0xff] }
 0x264   : > { %2403 = vst [vmem:[%s4278_s11 + $0x50] sm:$0xff] %v2387_v49  ;;  %v2202_v40 = vor.u32 1.1754944e-38, %v2201_v20  ;;  %v1899_v36 = vsel %vm1896_vm13, %v1898_v47, %v1894_v43  ;;  %v2292_v57 = vmul.f32 %v4892_v29, %v1595_v16  ;;  %v1339_v53 = vadd.f32 %v4162_v45, %v1221_v56  ;;  %v5344_v47 = vld [vmem:[#allocation40_spill] sm:$0xff]  ;;  %v1127_v27 = vpop.f32.mrf.mxu0  ;;  %v1225_v43 = vpop.f32.mrf.mxu2 }
 0x265   : > { %vm2200_vm15 = vcmp.eq.f32.partialorder %v2199_v17, 8.507059e+37  ;;  %v2198_v24 = vsel %vm2197_vm14, %v3403_v61, %v2194_v15  ;;  %v2324_v41 = vmul.f32 %v2308_v22, %v1899_v36  ;;  %v1125_v0 = vadd.f32 %v1124_v38, %v5343_v21 }
 0x266   : > { %v2203_v50 = vsel %vm2200_vm15, %v2202_v40, %v2198_v24  ;;  %v3000_v10 = vmul.f32 -1.442695, %v1339_v53  ;;  %v1174_v20 = vadd.f32 %v1173_v60, %v5344_v47  ;;  %v1270_v3 = vadd.f32 %v1269_v23, %v5345_v63 }
 0x267   : > { %v2340_v1 = vadd.f32 %v2324_v41, %v2292_v57  ;;  %v2372_v62 = vmul.f32 %v2356_v6, %v2203_v50  ;;  %v1341_v29 = vadd.f32 %v4152_v13, %v1125_v0  ;;  %v1223_v61 = vadd.f32 %v1222_v2, %v5346_v7  ;;  %v5354_v0 = vld [vmem:[#allocation45_spill] sm:$0xff] }
 0x268   : > { %v4955_v34 = vpop.eup %3404  ;;  %3408 = vpow2.f32 %v3000_v10  ;;  %v1342_v31 = vadd.f32 %v4156_v5, %v1174_v20  ;;  %v1128_v8 = vadd.f32 %v1127_v27, %v5347_v37  ;;  %v1606_v58 = vand.u32 2147483647, %v4932_v42 }
 0x269   : > { %v3407_v44 = vpop.eup %3406  ;;  %v2388_v17 = vadd.f32 %v2372_v62, %v2340_v1  ;;  %v1598_v30 = vmul.f32 %v4955_v34, %v4932_v42  ;;  %3410 = vtanh.f32 %v2387_v49  ;;  %v2969_v52 = vmul.f32 -1.442695, %v1341_v29  ;;  %v2357_v49 = vld [vmem:[%s3978_s4 + $0x60] sm:$0xff] }
 0x26a   : > { %v4963_v12 = vadd.f32 1.0, %v3407_v44  ;;  %v1343_v39 = vadd.f32 %v4162_v45, %v1223_v61  ;;  %v1272_v4 = vadd.f32 %v1271_v11, %v5348_v25  ;;  %v2985_v9 = vmul.f32 -1.442695, %v1342_v31  ;;  %v5357_v61 = vld [vmem:[#allocation46_spill] sm:$0xff]  ;;  %v2309_v25 = vld [vmem:[%s3963_s14 + $0x60] sm:$0xff] }
 0x26b   : > { %2404 = vst [vmem:[%s4278_s11 + $0x58] sm:$0xff] %v2388_v17  ;;  %3412 = vtanh.f32 %v2388_v17  ;;  %v1599_v33 = vsub.f32 1.0, %v1598_v30  ;;  %v1340_v32 = vadd.f32 %v4171_v55, %v1270_v3  ;;  %v1608_v23 = vand.u32 2147483648, %v4932_v42 }
 0x26c   : > { %3414 = vrcp.f32 %v4963_v12  ;;  %v3001_v51 = vmul.f32 -1.442695, %v1343_v39  ;;  %v1345_v59 = vadd.f32 %v4152_v13, %v1128_v8  ;;  %v1177_v46 = vadd.f32 %v1176_v19, %v5349_v14 }
 0x26d   : > { %v1600_v38 = vmul.f32 %v4955_v34, %v1599_v33  ;;  %3416 = vpow2.f32 %v2969_v52  ;;  %vm1603_vm0 = vweird.f32 %v4955_v34  ;;  %v1344_v18 = vadd.f32 %v4171_v55, %v1272_v4 }
 0x26e   : > { %v3409_v28 = vpop.eup %3408  ;;  %3418 = vpow2.f32 %v2985_v9  ;;  %vm1602_vm1 = vweird.f32 %v4932_v42  ;;  %vm4984_vm2 = vcmp.eq.f32.partialorder %v1606_v58, 8.507059e+37  ;;  %v2970_v26 = vmul.f32 -1.442695, %v1345_v59 }
 0x26f   : > { %v4976_v35 = vadd.f32 1.0, %v3409_v28  ;;  %v3411_v54 = vpop.eup %3410  ;;  %v1601_v48 = vadd.f32 %v4955_v34, %v1600_v38  ;;  %3420 = vpow2.f32 %v3001_v51  ;;  %v1609_v15 = vor.u32 1.1754944e-38, %v1608_v23  ;;  %vm4994_vm4 = vmor %vm1602_vm1, %vm1603_vm0 }
 0x270   : > { %v1346_v16 = vadd.f32 %v4156_v5, %v1177_v46  ;;  %vm1906_vm3 = vweird.f32 %v4963_v12  ;;  %v1912_v57 = vand.u32 2147483648, %v4963_v12  ;;  %v1910_v6 = vand.u32 2147483647, %v4963_v12 }
 0x271   : > { %v3413_v56 = vpop.eup %3412  ;;  %3422 = vrcp.f32 %v4976_v35  ;;  %v1605_v53 = vsel %vm4994_vm4, %v4955_v34, %v1601_v48  ;;  %v2214_v21 = vand.u32 2147483647, %v4976_v35  ;;  %v1226_v2 = vadd.f32 %v1225_v43, %v5354_v0  ;;  %v1274_v34 = vpop.f32.mrf.mxu3 }
 0x272   : > { %v3415_v22 = vpop.eup %3414  ;;  %v3110_v60 = vpack.c.bf16 %v3413_v56, %v3411_v54  ;;  %3424 = vtanh.f32 %v1340_v32  ;;  %v2986_v41 = vmul.f32 -1.442695, %v1346_v16  ;;  %v2216_v62 = vand.u32 2147483648, %v4976_v35 }
 0x273   : > { %v3417_v40 = vpop.eup %3416  ;;  %v1902_v36 = vmul.f32 %v3415_v22, %v4963_v12  ;;  %3426 = vtanh.f32 %v1344_v18  ;;  %vm1907_vm5 = vweird.f32 %v3415_v22  ;;  %v1610_v27 = vsel %vm4984_vm2, %v1609_v15, %v1605_v53 }
 0x274   : > { %3126 = vst [vmem:[%s4376_s1 + $0x28] sm:$0xff] %v3110_v60   ;;  %v5003_v24 = vadd.f32 1.0, %v3417_v40  ;;  %v3419_v50 = vpop.eup %3418  ;;  %3428 = vpow2.f32 %v2970_v26  ;;  %v1913_v30 = vor.u32 1.1754944e-38, %v1912_v57  ;;  %vm5016_vm6 = vcmp.eq.f32.partialorder %v1910_v6, 8.507059e+37  ;;  %vm1908_vm8 = vmor %vm1906_vm3, %vm1907_vm5 }
 0x275   : > { %v1903_v10 = vsub.f32 1.0, %v1902_v36  ;;  %v3421_v1 = vpop.eup %3420  ;;  %v5009_v29 = vadd.f32 1.0, %v3419_v50  ;;  %vm2210_vm7 = vweird.f32 %v4976_v35  ;;  %v5024_v11 = vadd.f32 %v1274_v34, %v5357_v61 }
 0x276   : > { %3430 = vrcp.f32 %v5003_v24  ;;  %v5013_v44 = vadd.f32 1.0, %v3421_v1  ;;  %vm5031_vm9 = vcmp.eq.f32.partialorder %v2214_v21, 8.507059e+37  ;;  %v2217_v39 = vor.u32 1.1754944e-38, %v2216_v62 }
 0x277   : > { %v3423_v47 = vpop.eup %3422  ;;  %v1904_v20 = vmul.f32 %v3415_v22, %v1903_v10  ;;  %3432 = vpow2.f32 %v2986_v41  ;;  %vm1617_vm10 = vweird.f32 %v5003_v24  ;;  %v1621_v4 = vand.u32 2147483647, %v5003_v24 }
 0x278   : > { %v3425_v17 = vpop.eup %3424  ;;  %v2206_v63 = vmul.f32 %v3423_v47, %v4976_v35  ;;  %3434 = vrcp.f32 %v5009_v29  ;;  %v1347_v19 = vadd.f32 %v4162_v45, %v1226_v2  ;;  %vm2211_vm11 = vweird.f32 %v3423_v47 }
 0x279   : > { %v1905_v7 = vadd.f32 %v3415_v22, %v1904_v20  ;;  %3436 = vrcp.f32 %v5013_v44  ;;  %v5026_v52 = vpop.eup %3426  ;;  %v2293_v37 = vmul.f32 %v3425_v17, %v1610_v27  ;;  %v1623_v51 = vand.u32 2147483648, %v5003_v24  ;;  %vm2212_vm13 = vmor %vm2210_vm7, %vm2211_vm11  ;;  %v2310_v17 = vld [vmem:[%s3963_s14 + $0x68] sm:$0xff] }
 0x27a   : > { %v2207_v31 = vsub.f32 1.0, %v2206_v63  ;;  %v3429_v8 = vpop.eup %3428  ;;  %vm1921_vm12 = vweird.f32 %v5009_v29  ;;  %v1927_v23 = vand.u32 2147483648, %v5009_v29  ;;  %v2229_v59 = vand.u32 2147483647, %v5013_v44  ;;  %v2358_v63 = vld [vmem:[%s3978_s4 + $0x68] sm:$0xff] }
 0x27b   : > { %v1909_v58 = vsel %vm1908_vm8, %v3415_v22, %v1905_v7  ;;  %v5046_v48 = vadd.f32 1.0, %v3429_v8  ;;  %v2231_v60 = vand.u32 2147483648, %v5013_v44  ;;  %v3002_v15 = vmul.f32 -1.442695, %v1347_v19 }
 0x27c   : > { %v3431_v38 = vpop.eup %3430  ;;  %v2208_v9 = vmul.f32 %v3423_v47, %v2207_v31  ;;  %v1914_v12 = vsel %vm5016_vm6, %v1913_v30, %v1909_v58  ;;  %v1925_v53 = vand.u32 2147483647, %v5009_v29  ;;  %v1624_v0 = vor.u32 1.1754944e-38, %v1623_v51  ;;  %v1129_v31 = vpop.f32.mrf.mxu0 }
 0x27d   : > { %v3433_v28 = vpop.eup %3432  ;;  %v1613_v32 = vmul.f32 %v3431_v38, %v5003_v24  ;;  %v2325_v54 = vmul.f32 %v2309_v25, %v1914_v12  ;;  %vm1618_vm14 = vweird.f32 %v3431_v38  ;;  %3438 = vrcp.f32 %v5046_v48  ;;  %v1178_v12 = vpop.f32.mrf.mxu1 }
 0x27e   : > { %v3435_v14 = vpop.eup %3434  ;;  %v2209_v46 = vadd.f32 %v3423_v47, %v2208_v9  ;;  %v5048_v18 = vadd.f32 1.0, %v3433_v28  ;;  %vm1619_vm1 = vmor %vm1617_vm10, %vm1618_vm14  ;;  %vm2225_vm2 = vweird.f32 %v5013_v44  ;;  %vm1622_vm3 = vcmp.eq.f32.partialorder %v1621_v4, 8.507059e+37  ;;  %v1227_v51 = vpop.f32.mrf.mxu2 }
 0x27f   : > { %v3437_v56 = vpop.eup %3436  ;;  %v1614_v26 = vsub.f32 1.0, %v1613_v32  ;;  %v1917_v22 = vmul.f32 %v3435_v14, %v5009_v29  ;;  %v2341_v35 = vadd.f32 %v2325_v54, %v2293_v37  ;;  %vm1922_vm15 = vweird.f32 %v3435_v14 }
 0x280   : > { %v2213_v16 = vsel %vm2212_vm13, %v3423_v47, %v2209_v46  ;;  %v2221_v43 = vmul.f32 %v3437_v56, %v5013_v44  ;;  %3440 = vrcp.f32 %v5048_v18  ;;  %vm2226_vm0 = vweird.f32 %v3437_v56  ;;  %vm1923_vm4 = vmor %vm1921_vm12, %vm1922_vm15  ;;  %v5361_v46 = vld [vmem:[#allocation48_spill] sm:$0xff] }
 0x281   : > { %v2218_v40 = vsel %vm5031_vm9, %v2217_v39, %v2213_v16  ;;  %v1918_v36 = vsub.f32 1.0, %v1917_v22  ;;  %v1615_v57 = vmul.f32 %v3431_v38, %v1614_v26  ;;  %3442 = vpow2.f32 %v3002_v15  ;;  %vm2227_vm5 = vmor %vm2225_vm2, %vm2226_vm0 }
 0x282   : > { %v2373_v42 = vmul.f32 %v2357_v49, %v2218_v40  ;;  %v2222_v6 = vsub.f32 1.0, %v2221_v43  ;;  %v1928_v34 = vor.u32 1.1754944e-38, %v1927_v23  ;;  %v2232_v20 = vor.u32 1.1754944e-38, %v2231_v60 }
 0x283   : > { %v1919_v41 = vmul.f32 %v3435_v14, %v1918_v36  ;;  %v1616_v50 = vadd.f32 %v3431_v38, %v1615_v57  ;;  %v5065_v62 = vpop.eup %3438  ;;  %vm1926_vm6 = vcmp.eq.f32.partialorder %v1925_v53, 8.507059e+37  ;;  %vm2230_vm7 = vcmp.eq.f32.partialorder %v2229_v59, 8.507059e+37 }
 0x284   : > { %v2389_v10 = vadd.f32 %v2373_v42, %v2341_v35  ;;  %v2223_v21 = vmul.f32 %v3437_v56, %v2222_v6  ;;  %v1628_v3 = vmul.f32 %v5065_v62, %v5046_v48  ;;  %v1348_v32 = vadd.f32 %v4171_v55, %v5024_v11 }
 0x285   : > { %v1620_v2 = vsel %vm1619_vm1, %v3431_v38, %v1616_v50  ;;  %v1920_v1 = vadd.f32 %v3435_v14, %v1919_v41  ;;  %v5360_v38 = vld [vmem:[#allocation47_spill] sm:$0xff]  ;;  %v1942_v59 = vand.u32 2147483648, %v5048_v18  ;;  %vm1633_vm9 = vweird.f32 %v5065_v62 }
 0x286   : > { %2405 = vst [vmem:[%s4278_s11 + $0x60] sm:$0xff] %v2389_v10  ;;  %v2224_v47 = vadd.f32 %v3437_v56, %v2223_v21  ;;  %v1625_v27 = vsel %vm1622_vm3, %v1624_v0, %v1620_v2  ;;  %v5071_v24 = vpop.eup %3440  ;;  %v1629_v8 = vsub.f32 1.0, %v1628_v3  ;;  %v1130_v9 = vadd.f32 %v1129_v31, %v5360_v38  ;;  %v2359_v3 = vld [vmem:[%s3978_s4 + $0x70] sm:$0xff] }
 0x287   : > { %v1924_v44 = vsel %vm1923_vm4, %v3435_v14, %v1920_v1  ;;  %v2294_v30 = vmul.f32 %v5026_v52, %v1625_v27  ;;  %v1932_v61 = vmul.f32 %v5071_v24, %v5048_v18  ;;  %v3443_v33 = vpop.eup %3442  ;;  %vm1937_vm8 = vweird.f32 %v5071_v24  ;;  %v2311_v1 = vld [vmem:[%s3963_s14 + $0x70] sm:$0xff] }
 0x288   : > { %v1929_v29 = vsel %vm1926_vm6, %v1928_v34, %v1924_v44  ;;  %v2228_v7 = vsel %vm2227_vm5, %v3437_v56, %v2224_v47  ;;  %v5080_v4 = vadd.f32 1.0, %v3443_v33  ;;  %v1630_v19 = vmul.f32 %v5065_v62, %v1629_v8  ;;  %v5362_v56 = vld [vmem:[#allocation49_spill] sm:$0xff] }
 0x289   : > { %v2233_v39 = vsel %vm2230_vm7, %v2232_v20, %v2228_v7  ;;  %v2326_v37 = vmul.f32 %v2310_v17, %v1929_v29  ;;  %v1933_v25 = vsub.f32 1.0, %v1932_v61  ;;  %v1349_v14 = vadd.f32 %v4152_v13, %v1130_v9  ;;  %v1276_v29 = vpop.f32.mrf.mxu3 }
 0x28a   : > { %v2374_v58 = vmul.f32 %v2358_v63, %v2233_v39  ;;  %3444 = vrcp.f32 %v5080_v4  ;;  %v1179_v54 = vadd.f32 %v1178_v12, %v5361_v46  ;;  %v1228_v49 = vadd.f32 %v1227_v51, %v5362_v56 }
 0x28b   : > { %v2342_v52 = vadd.f32 %v2326_v37, %v2294_v30  ;;  %v1934_v28 = vmul.f32 %v5071_v24, %v1933_v25  ;;  %3446 = vtanh.f32 %v2389_v10  ;;  %v1631_v26 = vadd.f32 %v5065_v62, %v1630_v19 }
 0x28c   : > { %v2971_v22 = vmul.f32 -1.442695, %v1349_v14  ;;  %vm1632_vm10 = vweird.f32 %v5046_v48  ;;  %v1638_v60 = vand.u32 2147483648, %v5046_v48  ;;  %v1350_v13 = vadd.f32 %v4156_v5, %v1179_v54 }
 0x28d   : > { %v2390_v23 = vadd.f32 %v2374_v58, %v2342_v52  ;;  %v1935_v11 = vadd.f32 %v5071_v24, %v1934_v28  ;;  %v1351_v15 = vadd.f32 %v4162_v45, %v1228_v49  ;;  %vm1936_vm11 = vweird.f32 %v5048_v18  ;;  %vm5102_vm12 = vmor %vm1632_vm10, %vm1633_vm9  ;;  %v5367_v58 = vld [vmem:[#allocation50_spill] sm:$0xff] }
 0x28e   : > { %v1636_v43 = vand.u32 2147483647, %v5046_v48  ;;  %v1940_v40 = vand.u32 2147483647, %v5048_v18  ;;  %vm5110_vm13 = vmor %vm1936_vm11, %vm1937_vm8  ;;  %v2987_v45 = vmul.f32 -1.442695, %v1350_v13  ;;  %v1635_v48 = vsel %vm5102_vm12, %v5065_v62, %v1631_v26 }
 0x28f   : > { %2406 = vst [vmem:[%s4278_s11 + $0x68] sm:$0xff] %v2390_v23  ;;  %3448 = vtanh.f32 %v2390_v23  ;;  %v3003_v5 = vmul.f32 -1.442695, %v1351_v15  ;;  %v1939_v18 = vsel %vm5110_vm13, %v5071_v24, %v1935_v11  ;;  %v1943_v6 = vor.u32 1.1754944e-38, %v1942_v59 }
 0x290   : > { %3450 = vpow2.f32 %v2971_v22  ;;  %v3445_v36 = vpop.eup %3444  ;;  %v1639_v53 = vor.u32 1.1754944e-38, %v1638_v60  ;;  %vm1637_vm14 = vcmp.eq.f32.partialorder %v1636_v43, 8.507059e+37  ;;  %vm1941_vm15 = vcmp.eq.f32.partialorder %v1940_v40, 8.507059e+37 }
 0x291   : > { %3452 = vtanh.f32 %v1348_v32  ;;  %v3447_v35 = vpop.eup %3446  ;;  %v2236_v42 = vmul.f32 %v3445_v36, %v5080_v4  ;;  %v2246_v21 = vand.u32 2147483648, %v5080_v4  ;;  %v1944_v2 = vsel %vm1941_vm15, %v1943_v6, %v1939_v18  ;;  %v2360_v18 = vld [vmem:[%s3978_s4 + $0x78] sm:$0xff]  ;;  %s3636_s4 = scalar_lea.hbm %s3635_s9, 128 }
 0x292   : > { %3454 = vpow2.f32 %v2987_v45  ;;  %v1640_v0 = vsel %vm1637_vm14, %v1639_v53, %v1635_v48  ;;  %vm2241_vm0 = vweird.f32 %v3445_v36  ;;  %v2244_v47 = vand.u32 2147483647, %v5080_v4  ;;  %p3637_p1 = scmp.ne.s32.totalorder %s3635_s9, %s3636_s4  ;;  %p3642_p10 = scmp.lt.s32.totalorder %s3640_s28, %s3636_s4 }
 0x293   : > { %v2237_v50 = vsub.f32 1.0, %v2236_v42  ;;  %3456 = vpow2.f32 %v3003_v5  ;;  %vm2240_vm1 = vweird.f32 %v5080_v4  ;;  %v2327_v44 = vmul.f32 %v2311_v1, %v1944_v2  ;;  %v2312_v5 = vld [vmem:[%s3963_s14 + $0x78] sm:$0xff] }
 0x294   : > { %vm2242_vm2 = vmor %vm2240_vm1, %vm2241_vm0  ;;  %v2247_v63 = vor.u32 1.1754944e-38, %v2246_v21  ;;  %vm2245_vm3 = vcmp.eq.f32.partialorder %v2244_v47, 8.507059e+37  ;;  %v1277_v25 = vadd.f32 %v1276_v29, %v5367_v58  ;;  %p3638_p4 = pnand %p3637_p1, %p3848_p7  ;;  %p3643_p11 = por %p3642_p10, %p3641_p9 }
 0x295   : > { %v3449_v41 = vpop.eup %3448  ;;  %v2238_v34 = vmul.f32 %v3445_v36, %v2237_v50 }
 0x296   : > { %v3115_v10 = vpack.c.bf16 %v3449_v41, %v3447_v35  ;;  %v3451_v62 = vpop.eup %3450  ;;  %v1352_v38 = vadd.f32 %v4171_v55, %v1277_v25  ;;  %p3639_p8 = pneg %p3638_p4 }
 0x297   : > { %v3453_v20 = vpop.eup %3452  ;;  %v1416_v27 = vadd.f32 1.0, %v3451_v62  ;;  %v2239_v17 = vadd.f32 %v3445_v36, %v2238_v34 }
 0x298   : > { %3127 = vst [vmem:[%s4376_s1 + $0x30] sm:$0xff] %v3115_v10   ;;  %v2295_v24 = vmul.f32 %v3453_v20, %v1640_v0  ;;  %v3455_v30 = vpop.eup %3454  ;;  %p3644_p2 = pnand %p3643_p11, %p3639_p8 }
 0x299   : > { %3458 = vrcp.f32 %v1416_v27  ;;  %v3457_v7 = vpop.eup %3456  ;;  %v2243_v61 = vsel %vm2242_vm2, %v3445_v36, %v2239_v17  ;;  %v1720_v31 = vadd.f32 1.0, %v3455_v30  ;;  %v1651_v9 = vand.u32 2147483647, %v1416_v27 }
 0x29a   : > { %v2248_v33 = vsel %vm2245_vm3, %v2247_v63, %v2243_v61  ;;  %v2024_v39 = vadd.f32 1.0, %v3457_v7  ;;  %v2343_v37 = vadd.f32 %v2327_v44, %v2295_v24  ;;  %v1653_v28 = vand.u32 2147483648, %v1416_v27 }
 0x29b   : > { %v2375_v8 = vmul.f32 %v2359_v3, %v2248_v33  ;;  %3460 = vrcp.f32 %v1720_v31  ;;  %vm1647_vm5 = vweird.f32 %v1416_v27  ;;  %vm5130_vm6 = vcmp.eq.f32.partialorder %v1651_v9, 8.507059e+37 }
 0x29c   : > { %3462 = vrcp.f32 %v2024_v39  ;;  %v1957_v56 = vand.u32 2147483648, %v1720_v31  ;;  %v1654_v26 = vor.u32 1.1754944e-38, %v1653_v28  ;;  %v2261_v22 = vand.u32 2147483648, %v2024_v39 }
 0x29d   : > { %v2391_v4 = vadd.f32 %v2375_v8, %v2343_v37  ;;  %3464 = vtanh.f32 %v1352_v38  ;;  %v1955_v60 = vand.u32 2147483647, %v1720_v31  ;;  %v2259_v15 = vand.u32 2147483647, %v2024_v39 }
 0x29e   : > { %vm1951_vm10 = vweird.f32 %v1720_v31  ;;  %v1958_v57 = vor.u32 1.1754944e-38, %v1957_v56  ;;  %vm2255_vm12 = vweird.f32 %v2024_v39  ;;  %v2262_v35 = vor.u32 1.1754944e-38, %v2261_v22 }
 0x29f   : > { %v3459_v52 = vpop.eup %3458  ;;  %2407 = vst [vmem:[%s4278_s11 + $0x70] sm:$0xff] %v2391_v4  ;;  %vm1956_vm14 = vcmp.eq.f32.partialorder %v1955_v60, 8.507059e+37  ;;  %vm2260_vm15 = vcmp.eq.f32.partialorder %v2259_v15, 8.507059e+37  ;;  %3466 = vtanh.f32 %v2391_v4 }
 0x2a0   : > { %v1643_v19 = vmul.f32 %v3459_v52, %v1416_v27  ;;  %vm1648_vm4 = vweird.f32 %v3459_v52 }
 0x2a1   : > { %v3461_v12 = vpop.eup %3460  ;;  %vm1649_vm8 = vmor %vm1647_vm5, %vm1648_vm4 }
 0x2a2   : > { %v1644_v51 = vsub.f32 1.0, %v1643_v19  ;;  %v3463_v32 = vpop.eup %3462  ;;  %v1947_v23 = vmul.f32 %v3461_v12, %v1720_v31  ;;  %vm1952_vm7 = vweird.f32 %v3461_v12 }
 0x2a3   : > { %v2251_v59 = vmul.f32 %v3463_v32, %v2024_v39  ;;  %vm2256_vm9 = vweird.f32 %v3463_v32  ;;  %v3465_v36 = vpop.eup %3464  ;;  %vm1953_vm11 = vmor %vm1951_vm10, %vm1952_vm7 }
 0x2a4   : > { %v1645_v14 = vmul.f32 %v3459_v52, %v1644_v51  ;;  %v1948_v46 = vsub.f32 1.0, %v1947_v23  ;;  %vm2257_vm13 = vmor %vm2255_vm12, %vm2256_vm9 }
 0x2a5   : > { %v2252_v49 = vsub.f32 1.0, %v2251_v59 }
 0x2a6   : > { %v1646_v55 = vadd.f32 %v3459_v52, %v1645_v14  ;;  %v1949_v11 = vmul.f32 %v3461_v12, %v1948_v46 }
 0x2a7   : > { %v2253_v13 = vmul.f32 %v3463_v32, %v2252_v49 }
 0x2a8   : > { %v1650_v16 = vsel %vm1649_vm8, %v3459_v52, %v1646_v55  ;;  %v1950_v40 = vadd.f32 %v3461_v12, %v1949_v11 }
 0x2a9   : > { %v1655_v43 = vsel %vm5130_vm6, %v1654_v26, %v1650_v16  ;;  %v2254_v45 = vadd.f32 %v3463_v32, %v2253_v13 }
 0x2aa   : > { %v1954_v42 = vsel %vm1953_vm11, %v3461_v12, %v1950_v40  ;;  %v2296_v48 = vmul.f32 %v3465_v36, %v1655_v43 }
 0x2ab   : > { %v1959_v6 = vsel %vm1956_vm14, %v1958_v57, %v1954_v42  ;;  %v2258_v53 = vsel %vm2257_vm13, %v3463_v32, %v2254_v45 }
 0x2ac   : > { %v2263_v41 = vsel %vm2260_vm15, %v2262_v35, %v2258_v53  ;;  %v2328_v50 = vmul.f32 %v2312_v5, %v1959_v6 }
 0x2ad   : > { %v2376_v10 = vmul.f32 %v2360_v18, %v2263_v41 }
 0x2ae   : > { %v2344_v21 = vadd.f32 %v2328_v50, %v2296_v48 }
 0x2b0   : > { %v2392_v0 = vadd.f32 %v2376_v10, %v2344_v21 }
 0x2b2   : > { %2408 = vst [vmem:[%s4278_s11 + $0x78] sm:$0xff] %v2392_v0  ;;  %3468 = vtanh.f32 %v2392_v0 }
 0x2b3   : > { %3647 = shalt.err (!%p3644_p2)
}
 0x2b4   : > { %s3737_s11 = smov 128   ;;  %s3738_s20 = smov 8   ;;  %v3467_v2 = vpop.eup %3466 }
 0x2b5   : > { %3141 = dma.vmem_to_hbm [thread:$0]  (%p3848_p7), %s2476_s23, 2048, %s2478_s29, %s2458_s15, %s3737_s11, %s3737_s11, %s3738_s20  }
 0x2b6   : > { %s2492_s13 = sshll.u32 %s4376_s1, 4  ;;  %s2494_s19 = sshll.u32 %s2491_s12, 4  ;;  %s2493_s13 = int_to_ptr.vmem [resolvable:$true] %s2492_s13  ;;  %s2495_s19 = int_to_ptr.hbm [resolvable:$true] %s2494_s19 }
 0x2b7   : > { %s2463_s10 = scalar_lea.sflag [#allocation13], %s3956_s16  ;;  %s3662_s8 = sshra.s32 %s2495_s19, 4  ;;  %s3663_s8 = int_to_ptr.hbm [resolvable:$true] %s3662_s8 }
 0x2b8   : > { %v3469_v1 = vpop.eup %3468  ;;  %s3664_s0 = scalar_lea.hbm %s3663_s8, 64  ;;  %s3668_s23 = scalar_lea.hbm %s5197_s7, 128 }
 0x2b9   : > { %v3120_v62 = vpack.c.bf16 %v3469_v1, %v3467_v2  ;;  %p3665_p12 = scmp.ne.s32.totalorder %s3663_s8, %s3664_s0  ;;  %p3669_p3 = scmp.lt.s32.totalorder %s3663_s8, %s5197_s7 }
 0x2ba   : > { %p3670_p5 = scmp.lt.s32.totalorder %s3668_s23, %s3664_s0 }
 0x2bb   : > { %3128 = vst [vmem:[%s4376_s1 + $0x38] sm:$0xff] %v3120_v62   ;;  %p3666_p13 = pnand %p3665_p12, %p3848_p7 }
 0x2bc   : > { %p3671_p1 = por %p3670_p5, %p3669_p3 }
 0x2bd   : > { %p3667_p0 = pneg %p3666_p13 }
 0x2bf   : > { %p3672_p4 = pnand %p3671_p1, %p3667_p0 }
 0x2c1   : > { %3675 = shalt.err (!%p3672_p4)
}
 0x2c2   : > { %s3739_s16 = smov 64   ;;  %s3740_s1 = smov 4  }
 0x2c3   : > { %3142 = dma.vmem_to_hbm [thread:$0]  (%p3848_p7), %s2493_s13, 1024, %s2495_s19, %s2463_s10, %s3739_s16, %s3739_s16, %s3740_s1  }
 0x2c4 PF: > { %s5370_s15 = sld [smem:[#allocation20_spill]]  ;;  %p5372_p8 = scmp.ge.s32.totalorder %s3730_s27, 2 }
 0x2c6   : > { %p3163_p9 = pnand %p5372_p8, %p3816_p6 }
 0x2c8   : > { %p3164_p10 = pneg %p3163_p9 }
 0x2ca   : > { %s2509_s4 = sand.u32 1, %s5370_s15  }
 0x2cb   : > { %s2510_s17 = scalar_lea.sflag [#allocation4], %s2509_s4 }
 0x2cc   : > { %3709 = dma.done.wait (%p3164_p10), %s2510_s17, 2048  }
 0x2cd   : > { %3711 = vsyncadd (%p3164_p10), %s2510_s17, 4294965248  ;;  %s2520_s18 = scalar_lea.sflag [#allocation13], %s2509_s4 }
 0x2ce   : > { %3713 = dma.done.wait (%p3164_p10), %s2520_s18, 1024  }
 0x2cf   : > { %3715 = vsyncadd (%p3164_p10), %s2520_s18, 4294966272  ;;  %s5373_s27 = sld [smem:[#allocation22_spill]]  ;;  %s5375_s24 = smov %s3722_s25 }
 0x2d0   : > { %s5374_s21 = sld [smem:[#allocation23_spill]]  ;;  %s5376_s25 = smov %s3726_s26 }
 0x2d5   : > { %p30_p7 = scmp.ge.s32.totalorder %s5373_s27, 4  }
 0x2d6   : > { %s5377_s26 = smov %s5374_s21 }
 0x2d7   :  { %32 = sbr.rel (!%p30_p7) target bundleno = 15 (0xf), region = 147 }
 0x2dc   :  { %2526 = vsyncpa [#allocation3], 1 }
 0x2dd   :  { %2528 = vsyncpa [#allocation3 + $0x1], 1 }
 0x2de   :  { %2529 = vsyncpa [#allocation6], 1 }
 0x2df   :  { %2531 = vsyncpa [#allocation6 + $0x1], 1 }
 0x2e0   :  { %2532 = vsyncpa [#allocation9], 1 }
 0x2e1   :  { %2534 = vsyncpa [#allocation9 + $0x1], 1 }
 0x2e2   :  { %2535 = vsyncpa [#allocation4], 1 }
 0x2e3   :  { %2537 = vsyncpa [#allocation4 + $0x1], 1 }
 0x2e4   :  { %2538 = vsyncpa [#allocation13], 1 }
 0x2e5   :  { %2540 = vsyncpa [#allocation13 + $0x1], 1 }

</bundles_post_ra>
